<compile_context>
chip_gen: v7x
topology: tpu7x:2x2x1
jax: 0.10.0
libtpu: 0.0.40
codegen_flags: <defaults>
</compile_context>

<pallas_src>
import functools

import jax
import jax.numpy as jnp
from jax import lax
from jax.experimental import pallas as pl
from jax.experimental.pallas import tpu as pltpu


def _round_up(n, m):
    return ((n + m - 1) // m) * m


def _supcon_kernel(*refs, temperature, base_temperature, n_rows, n_cols,
                   block_q, block_k, use_labels):
    """Tiled SupCon forward.

    refs (labels mode): rlab[bq,1] i32, clab[1,bk] i32, pcnt[bq,1] f32,
                        q[bq,D] f32, ct[D,bk] f32, out[1,8,128] f32,
                        scratch m,l,ps each [bq,1] f32.
    refs (mask mode):   mask[bq,bk] f32, pcnt[bq,1] f32, q, ct, out, scratch.
    """
    if use_labels:
        rlab_ref, clab_ref, pcnt_ref, q_ref, ct_ref, out_ref, m_i, l_i, ps_i = refs
    else:
        mask_ref, pcnt_ref, q_ref, ct_ref, out_ref, m_i, l_i, ps_i = refs

    i = pl.program_id(0)
    k = pl.program_id(1)
    bq, bk = block_q, block_k
    inv_t = float(1.0 / temperature)
    ragged_cols = (n_cols % bk) != 0          # static Python bool
    ragged_rows = (n_rows % bq) != 0          # static Python bool

    @pl.when(k == 0)
    def _init():
        m_i[...] = jnp.full_like(m_i, -jnp.inf)
        l_i[...] = jnp.zeros_like(l_i)
        ps_i[...] = jnp.zeros_like(ps_i)

    # adc[a, b] = <q_a, c_b> / temperature.  Contrast is pre-transposed [D, N]
    # so the MXU sees [M,K]x[K,N] directly (no in-kernel transpose), f32 acc.
    adc = lax.dot_general(q_ref[...], ct_ref[...], (((1,), (0,)), ((), ())),
                          preferred_element_type=jnp.float32) * inv_t    # [bq, bk]

    # Online row max over all columns (incl. diag/padding -- cancels exactly).
    m_prev = m_i[...]
    m_new = jnp.maximum(m_prev, jnp.max(adc, axis=1, keepdims=True))     # [bq, 1]
    alpha = jnp.exp(m_prev - m_new)

    # The reference's +0.001 is folded into the finalize (log(l) + 0.001).
    e = jnp.exp(adc - m_new)                                             # [bq, bk]

    col_ok = None
    if ragged_cols:
        col_ok = (k * bk + lax.broadcasted_iota(jnp.int32, (1, bk), 1)) < n_cols
        e = jnp.where(col_ok, e, 0.0)

    if use_labels:
        # Padded col labels are 0 and could match real label-0 rows; col_ok
        # (compiled in exactly when padding exists) neutralizes them.
        pos = rlab_ref[...] == clab_ref[...]                             # [bq, bk] bool
        if ragged_cols:
            pos = jnp.logical_and(pos, col_ok)
        pos = pos.astype(jnp.float32)
    else:
        pos = mask_ref[...]                                              # [bq, bk] f32

    # Only 3 lane reductions per step (max, e_sum, p_sum): positive counts are
    # precomputed in the wrapper, so the 4th reduction (and pc scratch) is gone.
    e_sum = jnp.sum(e, axis=1, keepdims=True)
    p_sum = jnp.sum(pos * adc, axis=1, keepdims=True)

    l_i[...] = alpha * l_i[...] + e_sum
    ps_i[...] = ps_i[...] + p_sum
    m_i[...] = m_new

    # Self-contrast exclusion: executed only on tiles touching the global
    # diagonal (i==k when bq==bk), not on every grid step.
    touches_diag = jnp.logical_and(k * bk < (i + 1) * bq, i * bq < (k + 1) * bk)

    @pl.when(touches_diag)
    def _diag_correction():
        row_g = i * bq + lax.broadcasted_iota(jnp.int32, (bq, bk), 0)
        col_g = k * bk + lax.broadcasted_iota(jnp.int32, (bq, bk), 1)
        eye = row_g == col_g
        if ragged_cols:
            eye = jnp.logical_and(eye, col_ok)
        has_diag = jnp.sum(jnp.where(eye, 1.0, 0.0), axis=1, keepdims=True)    # 0/1
        diag_logit = jnp.sum(jnp.where(eye, adc, 0.0), axis=1, keepdims=True)  # [bq,1]
        # Same-precision cancellation: removed denominator term comes from adc
        # itself (stays exact even if the matmul is later fed bf16).
        l_i[...] = l_i[...] - has_diag * jnp.exp(diag_logit - m_new)
        if use_labels:
            diag_pos = has_diag            # a label always matches itself
        else:
            diag_pos = jnp.sum(jnp.where(eye, pos, 0.0), axis=1, keepdims=True)
        ps_i[...] = ps_i[...] - diag_pos * diag_logit

    @pl.when(k == pl.num_programs(1) - 1)
    def _finalize():
        pc = pcnt_ref[...]                                               # [bq, 1]
        log_denom = m_i[...] + jnp.log(l_i[...]) + 0.001
        # sum_j mask*log_prob = ps - pc*log_denom; mean over positives.
        # (pc == 0 for a real anchor -> NaN, matching the PyTorch reference.)
        mlpp = (ps_i[...] - pc * log_denom) / pc
        per_anchor = (-(temperature / base_temperature)) * mlpp          # [bq, 1]
        if ragged_rows:
            row_ok = (i * bq + lax.broadcasted_iota(jnp.int32, (bq, 1), 0)) < n_rows
            per_anchor = jnp.where(row_ok, per_anchor, 0.0)              # drop padded rows
        partial = jnp.sum(per_anchor)
        out_ref[...] = jnp.broadcast_to(partial, out_ref.shape).astype(out_ref.dtype)


def supcon_loss(features, labels=None, mask=None, *, temperature=0.2,
                contrast_mode='all', base_temperature=0.2,
                block_q=128, block_k=128, vmem_limit_bytes=None):
    """JAX/Pallas equivalent of SupConLoss.forward (modes 'all' and 'one').

    block_q / block_k: anchor-row / contrast-column tile sizes.  Defaults are
    safe everywhere; for large D use block_k=256 on v6e/v7x (MXU fill) and a
    larger block_q on v5e (less contrast re-streaming) -- the wrapper raises
    the scoped VMEM limit automatically when tiles are enlarged.
    """
    if features.ndim < 3:
        raise ValueError('`features` needs to be [bsz, n_views, ...]')
    if features.ndim > 3:
        features = features.reshape(features.shape[0], features.shape[1], -1)
    features = features.astype(jnp.float32)
    batch_size, contrast_count, dim = features.shape

    if block_q % 8 != 0:
        raise ValueError('block_q must be a multiple of 8')
    if block_k % 128 != 0:
        raise ValueError('block_k must be a multiple of 128')

    # contrast_feature = cat(unbind(features, dim=1), dim=0) -> view-major [V*B, D]
    contrast_feature = jnp.transpose(features, (1, 0, 2)).reshape(
        contrast_count * batch_size, dim)

    if contrast_mode == 'one':
        anchor_feature = features[:, 0]
        anchor_count = 1
    elif contrast_mode == 'all':
        anchor_feature = contrast_feature
        anchor_count = contrast_count
    else:
        raise ValueError('Unknown mode: {}'.format(contrast_mode))

    n_rows = anchor_count * batch_size       # number of anchors
    n_cols = contrast_count * batch_size     # number of contrast samples

    if labels is not None and mask is not None:
        raise ValueError('Cannot define both `labels` and `mask`')
    use_labels = mask is None
    if use_labels:
        if labels is None:
            # SimCLR case: mask = eye(B)  <=>  labels = arange(B)
            labels_eff = jnp.arange(batch_size, dtype=jnp.int32)
        else:
            labels_eff = jnp.asarray(labels).reshape(-1).astype(jnp.int32)
            if labels_eff.shape[0] != batch_size:
                raise ValueError('Num of labels does not match num of features')

    bq, bk = block_q, block_k
    n_rows_p = _round_up(n_rows, bq)
    n_cols_p = _round_up(n_cols, bk)
    num_i = n_rows_p // bq
    num_k = n_cols_p // bk

    anchor_p = jnp.pad(anchor_feature, ((0, n_rows_p - n_rows), (0, 0)))
    # Contrast is stored transposed [D, N] so the kernel's matmul needs no transpose.
    contrast_t = contrast_feature.T
    contrast_t_p = jnp.pad(contrast_t, ((0, 0), (0, n_cols_p - n_cols)))

    feat_specs = [
        pl.BlockSpec((bq, dim), lambda i, k: (i, 0)),    # anchor row tile
        pl.BlockSpec((dim, bk), lambda i, k: (0, k)),    # contrast^T col tile
    ]

    # Precompute per-anchor positive counts (self excluded), O(B^2) in XLA.
    if use_labels:
        counts = jnp.sum(
            (labels_eff[:, None] == labels_eff[None, :]).astype(jnp.float32), axis=1)
        pcnt_b = contrast_count * counts - 1.0
    else:
        mask_f = jnp.asarray(mask, dtype=jnp.float32)
        pcnt_b = contrast_count * jnp.sum(mask_f, axis=1) - jnp.diagonal(mask_f)
    pcnt_rows = jnp.tile(pcnt_b, anchor_count)
    # Padded rows get pcnt=1 (their per-anchor loss is masked out in-kernel).
    pcnt_p = jnp.pad(pcnt_rows, (0, n_rows_p - n_rows),
                     constant_values=1.0).reshape(n_rows_p, 1)
    pcnt_spec = pl.BlockSpec((bq, 1), lambda i, k: (i, 0))

    if use_labels:
        row_labels = jnp.pad(jnp.tile(labels_eff, anchor_count),
                             (0, n_rows_p - n_rows)).reshape(n_rows_p, 1)
        col_labels = jnp.pad(jnp.tile(labels_eff, contrast_count),
                             (0, n_cols_p - n_cols)).reshape(1, n_cols_p)
        inputs = (row_labels, col_labels, pcnt_p, anchor_p, contrast_t_p)
        in_specs = [
            pl.BlockSpec((bq, 1), lambda i, k: (i, 0)),  # row labels
            pl.BlockSpec((1, bk), lambda i, k: (0, k)),  # col labels
            pcnt_spec,
        ] + feat_specs
    else:
        mask_tiled = jnp.tile(mask_f, (anchor_count, contrast_count))
        mask_tiled = jnp.pad(mask_tiled,
                             ((0, n_rows_p - n_rows), (0, n_cols_p - n_cols)))
        inputs = (mask_tiled, pcnt_p, anchor_p, contrast_t_p)
        in_specs = [pl.BlockSpec((bq, bk), lambda i, k: (i, k)),
                    pcnt_spec] + feat_specs

    if vmem_limit_bytes is None:
        # Rough double-buffered streamed tiles + [bq,bk] f32 intermediates; only
        # raise the scoped limit when larger-than-default tiles are requested.
        # (Re-derive headroom for v7x's 64 MiB physical VMEM before going huge.)
        streamed = bq * dim + dim * bk + bk + 2 * bq
        if not use_labels:
            streamed += bq * bk
        est = 4 * (2 * streamed + 4 * bq * bk + 3 * bq + 8 * 128)
        if est > 12 * (1 << 20):
            vmem_limit_bytes = int(min(112 * (1 << 20), 2 * est))

    cost = pl.CostEstimate(
        flops=int(2 * n_rows_p * n_cols_p * dim),
        transcendentals=int(n_rows_p * n_cols_p),
        bytes_accessed=int(4 * (n_rows_p * dim + num_i * n_cols_p * dim
                                + num_i * 8 * 128)),
    )

    kernel = functools.partial(
        _supcon_kernel,
        temperature=float(temperature),
        base_temperature=float(base_temperature),
        n_rows=n_rows, n_cols=n_cols,
        block_q=bq, block_k=bk, use_labels=use_labels)

    partials = pl.pallas_call(
        kernel,
        out_shape=jax.ShapeDtypeStruct((num_i, 8, 128), jnp.float32),
        grid=(num_i, num_k),
        in_specs=in_specs,
        out_specs=pl.BlockSpec((1, 8, 128), lambda i, k: (i, 0, 0)),
        scratch_shapes=[pltpu.VMEM((bq, 1), jnp.float32) for _ in range(3)],
        compiler_params=pltpu.CompilerParams(
            dimension_semantics=("parallel", "arbitrary"),
            vmem_limit_bytes=vmem_limit_bytes),
        cost_estimate=cost,
    )(*inputs)

    # loss.view(anchor_count, batch_size).mean() == mean over all anchors
    return jnp.sum(partials[:, 0, 0]) / jnp.float32(n_rows)


def _supcon_loss_ref(features, labels, *, temperature=0.2, base_temperature=0.2):
    """Pure-JAX reference (mirrors the PyTorch code, contrast_mode='all')."""
    B, V, D = features.shape
    labels = labels.reshape(-1, 1)
    mask = (labels == labels.T).astype(jnp.float32)
    cf = jnp.transpose(features, (1, 0, 2)).reshape(V * B, D)
    adc = (cf @ cf.T) / temperature
    logits = adc - jnp.max(adc, axis=1, keepdims=True)
    N = V * B
    logits_mask = 1.0 - jnp.eye(N, dtype=jnp.float32)
    mask = jnp.tile(mask, (V, V)) * logits_mask
    exp_logits = jnp.exp(logits + 0.001) * logits_mask
    log_prob = logits - jnp.log(exp_logits.sum(1, keepdims=True))
    mlpp = (mask * log_prob).sum(1) / mask.sum(1)
    return jnp.mean(-(temperature / base_temperature) * mlpp)


if __name__ == "__main__":
    key = jax.random.PRNGKey(0)
    k_feat, k_lab = jax.random.split(key)

    B, V, D = 8, 2, 32
    feats = jax.random.normal(k_feat, (B, V, D), dtype=jnp.float32)
    # L2-normalize along feature dim (typical SupCon usage; forward works either way)
    feats = feats / jnp.linalg.norm(feats, axis=-1, keepdims=True)
    labels = jax.random.randint(k_lab, (B,), 0, 4)

    # Labels path
    loss_lab = jax.block_until_ready(supcon_loss(feats, labels=labels))
    ref_lab = _supcon_loss_ref(feats, labels)
    assert jnp.allclose(loss_lab, ref_lab, atol=1e-4, rtol=1e-4), (loss_lab, ref_lab)

    # SimCLR path (labels=None  <=>  mask=eye(B)  <=>  labels=arange(B))
    loss_sim = jax.block_until_ready(supcon_loss(feats))
    ref_sim = _supcon_loss_ref(feats, jnp.arange(B))
    assert jnp.allclose(loss_sim, ref_sim, atol=1e-4, rtol=1e-4), (loss_sim, ref_sim)

    # Explicit-mask path (same mask as the labels path)
    mask = (labels.reshape(-1, 1) == labels.reshape(1, -1)).astype(jnp.float32)
    loss_msk = jax.block_until_ready(supcon_loss(feats, mask=mask))
    assert jnp.allclose(loss_msk, ref_lab, atol=1e-4, rtol=1e-4), (loss_msk, ref_lab)

    print("KERNEL_OK")
</pallas_src>

<mosaic_0001>
module attributes {stable_mosaic.version = 11 : i64} {
  func.func @_supcon_kernel(%arg0: i32, %arg1: i32, %arg2: memref<128x1xi32, #tpu.memory_space<vmem>>, %arg3: memref<1x128xi32, #tpu.memory_space<vmem>>, %arg4: memref<128x1xf32, #tpu.memory_space<vmem>>, %arg5: memref<128x32xf32, #tpu.memory_space<vmem>>, %arg6: memref<32x128xf32, #tpu.memory_space<vmem>>, %arg7: memref<1x8x128xf32, #tpu.memory_space<vmem>>, %arg8: memref<128x1xf32, #tpu.memory_space<vmem>>, %arg9: memref<128x1xf32, #tpu.memory_space<vmem>>, %arg10: memref<128x1xf32, #tpu.memory_space<vmem>>) attributes {dimension_semantics = [#tpu.dimension_semantics<parallel>, #tpu.dimension_semantics<arbitrary>], iteration_bounds = array<i64: 1, 1>, scalar_prefetch = 0 : i64, scratch_operands = 3 : i64, tpu.core_type = #tpu.core_type<tc>, window_params = [{transform_indices = @transform_0, window_bounds = array<i64: 128, 1>}, {transform_indices = @transform_1, window_bounds = array<i64: 1, 128>}, {transform_indices = @transform_2, window_bounds = array<i64: 128, 1>}, {transform_indices = @transform_3, window_bounds = array<i64: 128, 32>}, {transform_indices = @transform_4, window_bounds = array<i64: 32, 128>}, {transform_indices = @transform_5, window_bounds = array<i64: 1, 8, 128>}]} {
    %c0_i32 = arith.constant 0 : i32
    %0 = arith.cmpi eq, %arg1, %c0_i32 : i32
    %1 = arith.extui %0 : i1 to i32
    %c0_i32_0 = arith.constant 0 : i32
    %2 = arith.cmpi ne, %1, %c0_i32_0 : i32
    scf.if %2 {
      %cst_33 = arith.constant 0xFF800000 : f32
      %63 = vector.broadcast %cst_33 : f32 to vector<128x1xf32>
      %c0_34 = arith.constant 0 : index
      %c0_35 = arith.constant 0 : index
      %64 = vector.load %arg8[%c0_34, %c0_35] : memref<128x1xf32, #tpu.memory_space<vmem>>, vector<128x1xf32>
      tpu.vector_store %arg8[%c0_34, %c0_35], %63 {strides = array<i32>} : memref<128x1xf32, #tpu.memory_space<vmem>>, vector<128x1xf32>,
      %cst_36 = arith.constant 0.000000e+00 : f32
      %65 = vector.broadcast %cst_36 : f32 to vector<128x1xf32>
      %c0_37 = arith.constant 0 : index
      %c0_38 = arith.constant 0 : index
      %66 = vector.load %arg9[%c0_37, %c0_38] : memref<128x1xf32, #tpu.memory_space<vmem>>, vector<128x1xf32>
      tpu.vector_store %arg9[%c0_37, %c0_38], %65 {strides = array<i32>} : memref<128x1xf32, #tpu.memory_space<vmem>>, vector<128x1xf32>,
      %cst_39 = arith.constant 0.000000e+00 : f32
      %67 = vector.broadcast %cst_39 : f32 to vector<128x1xf32>
      %c0_40 = arith.constant 0 : index
      %c0_41 = arith.constant 0 : index
      %68 = vector.load %arg10[%c0_40, %c0_41] : memref<128x1xf32, #tpu.memory_space<vmem>>, vector<128x1xf32>
      tpu.vector_store %arg10[%c0_40, %c0_41], %67 {strides = array<i32>} : memref<128x1xf32, #tpu.memory_space<vmem>>, vector<128x1xf32>,
    } else {
    }
    %c0 = arith.constant 0 : index
    %c0_1 = arith.constant 0 : index
    %3 = vector.load %arg5[%c0, %c0_1] : memref<128x32xf32, #tpu.memory_space<vmem>>, vector<128x32xf32>
    %c0_2 = arith.constant 0 : index
    %c0_3 = arith.constant 0 : index
    %4 = vector.load %arg6[%c0_2, %c0_3] : memref<32x128xf32, #tpu.memory_space<vmem>>, vector<32x128xf32>
    %cst = arith.constant dense<0.000000e+00> : vector<128x128xf32>
    %5 = tpu.matmul %3, %4, %cst {dimension_numbers = #tpu.dot_dimension_numbers<[1], [0], [0], [1], [0, 0, 1, 1], [], []>} : vector<128x32xf32>, vector<32x128xf32>, vector<128x128xf32> -> vector<128x128xf32>
    %cst_4 = arith.constant 5.000000e+00 : f32
    %6 = vector.broadcast %cst_4 : f32 to vector<128x128xf32>
    %7 = arith.mulf %5, %6 : vector<128x128xf32>
    %c0_5 = arith.constant 0 : index
    %c0_6 = arith.constant 0 : index
    %8 = vector.load %arg8[%c0_5, %c0_6] : memref<128x1xf32, #tpu.memory_space<vmem>>, vector<128x1xf32>
    %cst_7 = arith.constant dense<0xFF800000> : vector<128xf32>
    %9 = vector.multi_reduction <maximumf>, %7, %cst_7 [1] : vector<128x128xf32> to vector<128xf32>
    %10 = vector.shape_cast %9 : vector<128xf32> to vector<128x1xf32>
    %11 = arith.maximumf %8, %10 : vector<128x1xf32>
    %12 = arith.subf %8, %11 : vector<128x1xf32>
    %13 = math.exp %12 : vector<128x1xf32>
    %14 = vector.broadcast %11 : vector<128x1xf32> to vector<128x128xf32>
    %15 = arith.subf %7, %14 : vector<128x128xf32>
    %16 = math.exp %15 : vector<128x128xf32>
    %c128_i32 = arith.constant 128 : i32
    %17 = arith.muli %arg1, %c128_i32 : i32
    %18 = tpu.iota {dimensions = array<i32: 1>} : vector<1x128xi32>
    %19 = vector.broadcast %17 : i32 to vector<1x128xi32>
    %20 = arith.addi %19, %18 : vector<1x128xi32>
    %c16_i32 = arith.constant 16 : i32
    %21 = vector.broadcast %c16_i32 : i32 to vector<1x128xi32>
    %22 = arith.cmpi slt, %20, %21 : vector<1x128xi32>
    %cst_8 = arith.constant 0.000000e+00 : f32
    %23 = vector.shape_cast %22 : vector<1x128xi1> to vector<1x128xi1>
    %24 = vector.broadcast %23 : vector<1x128xi1> to vector<128x128xi1>
    %25 = vector.broadcast %cst_8 : f32 to vector<128x128xf32>
    %26 = arith.select %24, %16, %25 : vector<128x128xi1>, vector<128x128xf32>
    %c0_9 = arith.constant 0 : index
    %c0_10 = arith.constant 0 : index
    %27 = vector.load %arg2[%c0_9, %c0_10] : memref<128x1xi32, #tpu.memory_space<vmem>>, vector<128x1xi32>
    %c0_11 = arith.constant 0 : index
    %c0_12 = arith.constant 0 : index
    %28 = vector.load %arg3[%c0_11, %c0_12] : memref<1x128xi32, #tpu.memory_space<vmem>>, vector<1x128xi32>
    %29 = vector.broadcast %27 : vector<128x1xi32> to vector<128x128xi32>
    %30 = vector.broadcast %28 : vector<1x128xi32> to vector<128x128xi32>
    %31 = arith.cmpi eq, %29, %30 : vector<128x128xi32>
    %32 = vector.broadcast %22 : vector<1x128xi1> to vector<128x128xi1>
    %33 = arith.andi %31, %32 : vector<128x128xi1>
    %34 = arith.extui %33 : vector<128x128xi1> to vector<128x128xi32>
    %35 = arith.sitofp %34 : vector<128x128xi32> to vector<128x128xf32>
    %cst_13 = arith.constant dense<0.000000e+00> : vector<128xf32>
    %36 = vector.multi_reduction <add>, %26, %cst_13 [1] : vector<128x128xf32> to vector<128xf32>
    %37 = vector.shape_cast %36 : vector<128xf32> to vector<128x1xf32>
    %38 = arith.mulf %35, %7 : vector<128x128xf32>
    %cst_14 = arith.constant dense<0.000000e+00> : vector<128xf32>
    %39 = vector.multi_reduction <add>, %38, %cst_14 [1] : vector<128x128xf32> to vector<128xf32>
    %40 = vector.shape_cast %39 : vector<128xf32> to vector<128x1xf32>
    %c0_15 = arith.constant 0 : index
    %c0_16 = arith.constant 0 : index
    %41 = vector.load %arg9[%c0_15, %c0_16] : memref<128x1xf32, #tpu.memory_space<vmem>>, vector<128x1xf32>
    %42 = arith.mulf %13, %41 : vector<128x1xf32>
    %43 = arith.addf %42, %37 : vector<128x1xf32>
    %c0_17 = arith.constant 0 : index
    %c0_18 = arith.constant 0 : index
    %44 = vector.load %arg9[%c0_17, %c0_18] : memref<128x1xf32, #tpu.memory_space<vmem>>, vector<128x1xf32>
    tpu.vector_store %arg9[%c0_17, %c0_18], %43 {strides = array<i32>} : memref<128x1xf32, #tpu.memory_space<vmem>>, vector<128x1xf32>,
    %c0_19 = arith.constant 0 : index
    %c0_20 = arith.constant 0 : index
    %45 = vector.load %arg10[%c0_19, %c0_20] : memref<128x1xf32, #tpu.memory_space<vmem>>, vector<128x1xf32>
    %46 = arith.addf %45, %40 : vector<128x1xf32>
    %c0_21 = arith.constant 0 : index
    %c0_22 = arith.constant 0 : index
    %47 = vector.load %arg10[%c0_21, %c0_22] : memref<128x1xf32, #tpu.memory_space<vmem>>, vector<128x1xf32>
    tpu.vector_store %arg10[%c0_21, %c0_22], %46 {strides = array<i32>} : memref<128x1xf32, #tpu.memory_space<vmem>>, vector<128x1xf32>,
    %c0_23 = arith.constant 0 : index
    %c0_24 = arith.constant 0 : index
    %48 = vector.load %arg8[%c0_23, %c0_24] : memref<128x1xf32, #tpu.memory_space<vmem>>, vector<128x1xf32>
    tpu.vector_store %arg8[%c0_23, %c0_24], %11 {strides = array<i32>} : memref<128x1xf32, #tpu.memory_space<vmem>>, vector<128x1xf32>,
    %c128_i32_25 = arith.constant 128 : i32
    %49 = arith.muli %arg1, %c128_i32_25 : i32
    %c1_i32 = arith.constant 1 : i32
    %50 = arith.addi %arg0, %c1_i32 : i32
    %c128_i32_26 = arith.constant 128 : i32
    %51 = arith.muli %50, %c128_i32_26 : i32
    %52 = arith.cmpi slt, %49, %51 : i32
    %c128_i32_27 = arith.constant 128 : i32
    %53 = arith.muli %arg0, %c128_i32_27 : i32
    %c1_i32_28 = arith.constant 1 : i32
    %54 = arith.addi %arg1, %c1_i32_28 : i32
    %c128_i32_29 = arith.constant 128 : i32
    %55 = arith.muli %54, %c128_i32_29 : i32
    %56 = arith.cmpi slt, %53, %55 : i32
    %57 = arith.andi %52, %56 : i1
    %58 = arith.extui %57 : i1 to i32
    %c0_i32_30 = arith.constant 0 : i32
    %59 = arith.cmpi ne, %58, %c0_i32_30 : i32
    scf.if %59 {
      %c128_i32_33 = arith.constant 128 : i32
      %63 = arith.muli %arg0, %c128_i32_33 : i32
      %64 = tpu.iota {dimensions = array<i32: 0>} : vector<128x128xi32>
      %65 = vector.broadcast %63 : i32 to vector<128x128xi32>
      %66 = arith.addi %65, %64 : vector<128x128xi32>
      %c128_i32_34 = arith.constant 128 : i32
      %67 = arith.muli %arg1, %c128_i32_34 : i32
      %68 = tpu.iota {dimensions = array<i32: 1>} : vector<128x128xi32>
      %69 = vector.broadcast %67 : i32 to vector<128x128xi32>
      %70 = arith.addi %69, %68 : vector<128x128xi32>
      %71 = arith.cmpi eq, %66, %70 : vector<128x128xi32>
      %72 = vector.broadcast %22 : vector<1x128xi1> to vector<128x128xi1>
      %73 = arith.andi %71, %72 : vector<128x128xi1>
      %cst_35 = arith.constant 1.000000e+00 : f32
      %cst_36 = arith.constant 0.000000e+00 : f32
      %74 = vector.broadcast %cst_35 : f32 to vector<128x128xf32>
      %75 = vector.broadcast %cst_36 : f32 to vector<128x128xf32>
      %76 = arith.select %73, %74, %75 : vector<128x128xi1>, vector<128x128xf32>
      %cst_37 = arith.constant dense<0.000000e+00> : vector<128xf32>
      %77 = vector.multi_reduction <add>, %76, %cst_37 [1] : vector<128x128xf32> to vector<128xf32>
      %78 = vector.shape_cast %77 : vector<128xf32> to vector<128x1xf32>
      %cst_38 = arith.constant 0.000000e+00 : f32
      %79 = vector.broadcast %cst_38 : f32 to vector<128x128xf32>
      %80 = arith.select %73, %7, %79 : vector<128x128xi1>, vector<128x128xf32>
      %cst_39 = arith.constant dense<0.000000e+00> : vector<128xf32>
      %81 = vector.multi_reduction <add>, %80, %cst_39 [1] : vector<128x128xf32> to vector<128xf32>
      %82 = vector.shape_cast %81 : vector<128xf32> to vector<128x1xf32>
      %c0_40 = arith.constant 0 : index
      %c0_41 = arith.constant 0 : index
      %83 = vector.load %arg9[%c0_40, %c0_41] : memref<128x1xf32, #tpu.memory_space<vmem>>, vector<128x1xf32>
      %84 = arith.subf %82, %11 : vector<128x1xf32>
      %85 = math.exp %84 : vector<128x1xf32>
      %86 = arith.mulf %78, %85 : vector<128x1xf32>
      %87 = arith.subf %83, %86 : vector<128x1xf32>
      %c0_42 = arith.constant 0 : index
      %c0_43 = arith.constant 0 : index
      %88 = vector.load %arg9[%c0_42, %c0_43] : memref<128x1xf32, #tpu.memory_space<vmem>>, vector<128x1xf32>
      tpu.vector_store %arg9[%c0_42, %c0_43], %87 {strides = array<i32>} : memref<128x1xf32, #tpu.memory_space<vmem>>, vector<128x1xf32>,
      %c0_44 = arith.constant 0 : index
      %c0_45 = arith.constant 0 : index
      %89 = vector.load %arg10[%c0_44, %c0_45] : memref<128x1xf32, #tpu.memory_space<vmem>>, vector<128x1xf32>
      %90 = arith.mulf %78, %82 : vector<128x1xf32>
      %91 = arith.subf %89, %90 : vector<128x1xf32>
      %c0_46 = arith.constant 0 : index
      %c0_47 = arith.constant 0 : index
      %92 = vector.load %arg10[%c0_46, %c0_47] : memref<128x1xf32, #tpu.memory_space<vmem>>, vector<128x1xf32>
      tpu.vector_store %arg10[%c0_46, %c0_47], %91 {strides = array<i32>} : memref<128x1xf32, #tpu.memory_space<vmem>>, vector<128x1xf32>,
    } else {
    }
    %c0_i32_31 = arith.constant 0 : i32
    %60 = arith.cmpi eq, %arg1, %c0_i32_31 : i32
    %61 = arith.extui %60 : i1 to i32
    %c0_i32_32 = arith.constant 0 : i32
    %62 = arith.cmpi ne, %61, %c0_i32_32 : i32
    scf.if %62 {
      %c0_33 = arith.constant 0 : index
      %c0_34 = arith.constant 0 : index
      %63 = vector.load %arg4[%c0_33, %c0_34] : memref<128x1xf32, #tpu.memory_space<vmem>>, vector<128x1xf32>
      %c0_35 = arith.constant 0 : index
      %c0_36 = arith.constant 0 : index
      %64 = vector.load %arg8[%c0_35, %c0_36] : memref<128x1xf32, #tpu.memory_space<vmem>>, vector<128x1xf32>
      %c0_37 = arith.constant 0 : index
      %c0_38 = arith.constant 0 : index
      %65 = vector.load %arg9[%c0_37, %c0_38] : memref<128x1xf32, #tpu.memory_space<vmem>>, vector<128x1xf32>
      %66 = math.log %65 : vector<128x1xf32>
      %67 = arith.addf %64, %66 : vector<128x1xf32>
      %cst_39 = arith.constant 1.000000e-03 : f32
      %68 = vector.broadcast %cst_39 : f32 to vector<128x1xf32>
      %69 = arith.addf %67, %68 : vector<128x1xf32>
      %c0_40 = arith.constant 0 : index
      %c0_41 = arith.constant 0 : index
      %70 = vector.load %arg10[%c0_40, %c0_41] : memref<128x1xf32, #tpu.memory_space<vmem>>, vector<128x1xf32>
      %71 = arith.mulf %63, %69 : vector<128x1xf32>
      %72 = arith.subf %70, %71 : vector<128x1xf32>
      %73 = arith.divf %72, %63 : vector<128x1xf32>
      %cst_42 = arith.constant -1.000000e+00 : f32
      %74 = vector.broadcast %cst_42 : f32 to vector<128x1xf32>
      %75 = arith.mulf %74, %73 : vector<128x1xf32>
      %c128_i32_43 = arith.constant 128 : i32
      %76 = arith.muli %arg0, %c128_i32_43 : i32
      %77 = tpu.iota {dimensions = array<i32: 0>} : vector<128x1xi32>
      %78 = vector.broadcast %76 : i32 to vector<128x1xi32>
      %79 = arith.addi %78, %77 : vector<128x1xi32>
      %c16_i32_44 = arith.constant 16 : i32
      %80 = vector.broadcast %c16_i32_44 : i32 to vector<128x1xi32>
      %81 = arith.cmpi slt, %79, %80 : vector<128x1xi32>
      %cst_45 = arith.constant 0.000000e+00 : f32
      %82 = vector.broadcast %cst_45 : f32 to vector<128x1xf32>
      %83 = arith.select %81, %75, %82 : vector<128x1xi1>, vector<128x1xf32>
      %84 = vector.shape_cast %83 : vector<128x1xf32> to vector<1x128x1xf32>
      %cst_46 = arith.constant dense<0.000000e+00> : vector<1xf32>
      %85 = vector.multi_reduction <add>, %84, %cst_46 [1, 2] : vector<1x128x1xf32> to vector<1xf32>
      %86 = vector.shape_cast %85 : vector<1xf32> to vector<1x1x1xf32>
      %87 = vector.extract %86[0, 0, 0] : f32 from vector<1x1x1xf32>
      %88 = vector.broadcast %87 : f32 to vector<1x8x128xf32>
      %c0_47 = arith.constant 0 : index
      %c0_48 = arith.constant 0 : index
      %c0_49 = arith.constant 0 : index
      %89 = vector.load %arg7[%c0_47, %c0_48, %c0_49] : memref<1x8x128xf32, #tpu.memory_space<vmem>>, vector<1x8x128xf32>
      tpu.vector_store %arg7[%c0_47, %c0_48, %c0_49], %88 {strides = array<i32>} : memref<1x8x128xf32, #tpu.memory_space<vmem>>, vector<1x8x128xf32>,
    } else {
    }
    return
  }
  func.func @transform_0(%arg0: i32, %arg1: i32) -> (i32, i32) {
    %c0_i32 = arith.constant 0 : i32
    %c0_i32_0 = arith.constant 0 : i32
    return %arg0, %c0_i32 : i32, i32
  }
  func.func @transform_1(%arg0: i32, %arg1: i32) -> (i32, i32) {
    %c0_i32 = arith.constant 0 : i32
    %c0_i32_0 = arith.constant 0 : i32
    return %c0_i32, %arg1 : i32, i32
  }
  func.func @transform_2(%arg0: i32, %arg1: i32) -> (i32, i32) {
    %c0_i32 = arith.constant 0 : i32
    %c0_i32_0 = arith.constant 0 : i32
    return %arg0, %c0_i32 : i32, i32
  }
  func.func @transform_3(%arg0: i32, %arg1: i32) -> (i32, i32) {
    %c0_i32 = arith.constant 0 : i32
    %c0_i32_0 = arith.constant 0 : i32
    return %arg0, %c0_i32 : i32, i32
  }
  func.func @transform_4(%arg0: i32, %arg1: i32) -> (i32, i32) {
    %c0_i32 = arith.constant 0 : i32
    %c0_i32_0 = arith.constant 0 : i32
    return %c0_i32, %arg1 : i32, i32
  }
  func.func @transform_5(%arg0: i32, %arg1: i32) -> (i32, i32, i32) {
    %c0_i32 = arith.constant 0 : i32
    %c0_i32_0 = arith.constant 0 : i32
    %c0_i32_1 = arith.constant 0 : i32
    return %arg0, %c0_i32, %c0_i32_0 : i32, i32, i32
  }
}

</mosaic_0001>

<bundles_post_ra>
// kernel: tpu_custom_call.1
= control target key start
LH: loop header
LB: loop body
LE: loop exit
PB: predicated region body
PF: predicated region fallthrough
CT: control target
= control target key end

     0   :  { %vm94_vm0 = vcmask 261120   ;;  %s2887_s0 = inlined_call_operand.vmem [shape: s32[128,1], index: 0, kind: input, shape index: {}]   ;;  %s2888_s1 = inlined_call_operand.vmem [shape: s32[1,128], index: 1, kind: input, shape index: {}]   ;;  %s2889_s2 = inlined_call_operand.vmem [shape: f32[128,1], index: 2, kind: input, shape index: {}]   ;;  %s2890_s3 = inlined_call_operand.vmem [shape: f32[128,32], index: 3, kind: input, shape index: {}]   ;;  %s2891_s4 = inlined_call_operand.vmem [shape: f32[32,128], index: 4, kind: input, shape index: {}]   ;;  %s2892_s5 = inlined_call_operand.hbm [shape: f32[1,8,128], index: 5, kind: output, shape index: {}]  }
   0x1   :  { %v90_v0 = vld [vmem:[%s2891_s4] sm:$0xff]  ;;  %v91_v1 = vld [vmem:[%s2891_s4 + $0x8] sm:$0xff]  ;;  %v92_v2 = vld [vmem:[%s2891_s4 + $0x10] sm:$0xff] }
   0x2   :  { %v1677_v3 = vpack.c.bf16 %v91_v1, %v90_v0  ;;  %v93_v4 = vld [vmem:[%s2891_s4 + $0x18] sm:$0xff]  ;;  %v74_v5 = vld [vmem:[%s2890_s3] sm:$0xff] }
   0x3   :  { %v1681_v6 = vpack.c.bf16 %v93_v4, %v92_v2  ;;  %1653 = vmatprep.mubr.msk.f32.mxu0 %vm94_vm0, %v74_v5  ;;  %v82_v7 = vld [vmem:[%s2890_s3 + $0x40] sm:$0xff] }
   0x4   :  { %1678 = vmatprep.subr.bf16.mxu0 %v1677_v3  ;;  %1685 = vmatprep.subr.bf16.mxu1 %v1677_v3 }
   0x5   :  { %1680 = vmatpush3.bf16.msra.mxu0 %v1677_v3  ;;  %1687 = vmatpush3.bf16.msra.mxu1 %v1677_v3 }
   0x6   :  { %1682 = vmatprep.subr.bf16.mxu0 %v1681_v6  ;;  %1686 = vmatprep.subr.bf16.mxu1 %v1681_v6 }
   0x7   :  { %1665 = vmatprep.mubr.msk.f32.mxu1 %vm94_vm0, %v82_v7 }
   0x8   :  { %10 = vsyncpa [#allocation6], 0  ;;  %v75_v8 = vld [vmem:[%s2890_s3 + $0x8] sm:$0xff]  ;;  %v76_v10 = vld [vmem:[%s2890_s3 + $0x10] sm:$0xff]  ;;  %v545_v22 = vlaneseq  ;;  %v2893_v26 = vmov 0.0   ;;  %v1826_v28 = vmov 0  }
   0x9   :  { %1684 = vmatpush3.bf16.msra.mxu0 %v1681_v6  ;;  %1688 = vmatpush3.bf16.msra.mxu1 %v1681_v6  ;;  %v83_v9 = vld [vmem:[%s2890_s3 + $0x48] sm:$0xff]  ;;  %v84_v11 = vld [vmem:[%s2890_s3 + $0x50] sm:$0xff]  ;;  %v77_v12 = vld [vmem:[%s2890_s3 + $0x18] sm:$0xff]  ;;  %vm2916_vm6 = vcmask 7168   ;;  %v1827_v46 = vmov -inf  }
   0xa   :  { %v85_v13 = vld [vmem:[%s2890_s3 + $0x58] sm:$0xff]  ;;  %v78_v14 = vld [vmem:[%s2890_s3 + $0x20] sm:$0xff]  ;;  %v79_v16 = vld [vmem:[%s2890_s3 + $0x28] sm:$0xff]  ;;  %v1935_v23 = vshrl.u32 %v545_v22, 7  ;;  %v1937_v24 = vand.u32 127, %v545_v22  ;;  %1695 = vset.pattern.permute.xlu0 %v1826_v28  ;;  %1696 = vset.pattern.permute.xlu1 %v1826_v28  ;;  %26 = vst.msk [vmem:[#allocation2] sm:$0xff] %vm2916_vm6, %v1827_v46 }
   0xb   :  { %v86_v15 = vld [vmem:[%s2890_s3 + $0x60] sm:$0xff]  ;;  %v87_v17 = vld [vmem:[%s2890_s3 + $0x68] sm:$0xff]  ;;  %v80_v18 = vld [vmem:[%s2890_s3 + $0x30] sm:$0xff]  ;;  %27 = vst.msk [vmem:[#allocation2 + $0x8] sm:$0xff] %vm2916_vm6, %v1827_v46 }
   0xc   :  { %1654 = vmatmul.mubr.msk.f32.vlgmr.msra.gmra.mrb[0].mxu0 %vm94_vm0, %v75_v8  ;;  %1666 = vmatmul.mubr.msk.f32.vlgmr.msra.gmra.mrb[0].mxu1 %vm94_vm0, %v83_v9  ;;  %v88_v19 = vld [vmem:[%s2890_s3 + $0x70] sm:$0xff]  ;;  %v81_v20 = vld [vmem:[%s2890_s3 + $0x38] sm:$0xff]  ;;  %v923_v25 = vadd.s32 8, %v1935_v23  ;;  %vm549_vm1 = vcmp.lt.s32.totalorder %v1937_v24, 16  ;;  %vm955_vm4 = vcmp.eq.s32.totalorder %v1935_v23, %v1937_v24  ;;  %28 = vst.msk [vmem:[#allocation2 + $0x10] sm:$0xff] %vm2916_vm6, %v1827_v46  ;;  %29 = vst.msk [vmem:[#allocation2 + $0x18] sm:$0xff] %vm2916_vm6, %v1827_v46 }
   0xd   :  { %1656 = vmatprep.mubr.msk.f32.mxu0 %vm94_vm0, %v76_v10  ;;  %1668 = vmatprep.mubr.msk.f32.mxu1 %vm94_vm0, %v84_v11  ;;  %v89_v21 = vld [vmem:[%s2890_s3 + $0x78] sm:$0xff]  ;;  %vm1969_vm5 = vmand %vm955_vm4, %vm549_vm1  ;;  %30 = vst.msk [vmem:[#allocation2 + $0x20] sm:$0xff] %vm2916_vm6, %v1827_v46  ;;  %v568_v56 = vld [vmem:[%s2887_s0] sm:$0xff] }
   0xe   :  { %vm956_vm2 = vcmp.eq.s32.totalorder %v923_v25, %v1937_v24  ;;  %31 = vst.msk [vmem:[#allocation2 + $0x28] sm:$0xff] %vm2916_vm6, %v1827_v46  ;;  %32 = vst.msk [vmem:[#allocation2 + $0x30] sm:$0xff] %vm2916_vm6, %v1827_v46  ;;  %v987_v61 = vsel %vm1969_vm5, 1.0, %v2893_v26 }
   0xf   :  { %vm972_vm3 = vmand %vm956_vm2, %vm549_vm1  ;;  %33 = vst.msk [vmem:[#allocation2 + $0x38] sm:$0xff] %vm2916_vm6, %v1827_v46 }
  0x10   :  { %1657 = vmatmul.mubr.msk.f32.gmra.mrb[2].mxu0 %vm94_vm0, %v77_v12  ;;  %1669 = vmatmul.mubr.msk.f32.gmra.mrb[2].mxu1 %vm94_vm0, %v85_v13  ;;  %v988_v27 = vsel %vm972_vm3, 1.0, %v2893_v26  ;;  %34 = vst.msk [vmem:[#allocation2 + $0x40] sm:$0xff] %vm2916_vm6, %v1827_v46  ;;  %35 = vst.msk [vmem:[#allocation2 + $0x48] sm:$0xff] %vm2916_vm6, %v1827_v46 }
  0x11   :  { %1659 = vmatprep.mubr.msk.f32.mxu0 %vm94_vm0, %v78_v14  ;;  %1671 = vmatprep.mubr.msk.f32.mxu1 %vm94_vm0, %v86_v15  ;;  %36 = vst.msk [vmem:[#allocation2 + $0x50] sm:$0xff] %vm2916_vm6, %v1827_v46  ;;  %37 = vst.msk [vmem:[#allocation2 + $0x58] sm:$0xff] %vm2916_vm6, %v1827_v46  ;;  %v2120_v4 = vld [vmem:[#allocation2] sm:$0xff] }
  0x12   :  { %1005 = vadd.xlane.f32.xlu1 %v988_v27  ;;  %38 = vst.msk [vmem:[#allocation2 + $0x60] sm:$0xff] %vm2916_vm6, %v1827_v46  ;;  %39 = vst.msk [vmem:[#allocation2 + $0x68] sm:$0xff] %vm2916_vm6, %v1827_v46  ;;  %v2127_v8 = vld [vmem:[#allocation2 + $0x8] sm:$0xff] }
  0x13   :  { %40 = vst.msk [vmem:[#allocation2 + $0x70] sm:$0xff] %vm2916_vm6, %v1827_v46  ;;  %41 = vst.msk [vmem:[#allocation2 + $0x78] sm:$0xff] %vm2916_vm6, %v1827_v46 }
  0x14   :  { %1660 = vmatmul.mubr.msk.f32.gmra.mrb[4].mxu0 %vm94_vm0, %v79_v16  ;;  %1672 = vmatmul.mubr.msk.f32.gmra.mrb[4].mxu1 %vm94_vm0, %v87_v17  ;;  %42 = vst.msk [vmem:[#allocation3] sm:$0xff] %vm2916_vm6, %v2893_v26  ;;  %43 = vst.msk [vmem:[#allocation3 + $0x8] sm:$0xff] %vm2916_vm6, %v2893_v26  ;;  %v2150_v17 = vld [vmem:[#allocation2 + $0x18] sm:$0xff] }
  0x15   :  { %1662 = vmatprep.mubr.msk.f32.mxu0 %vm94_vm0, %v80_v18  ;;  %1674 = vmatprep.mubr.msk.f32.mxu1 %vm94_vm0, %v88_v19  ;;  %44 = vst.msk [vmem:[#allocation3 + $0x10] sm:$0xff] %vm2916_vm6, %v2893_v26  ;;  %45 = vst.msk [vmem:[#allocation3 + $0x18] sm:$0xff] %vm2916_vm6, %v2893_v26 }
  0x16   :  { %46 = vst.msk [vmem:[#allocation3 + $0x20] sm:$0xff] %vm2916_vm6, %v2893_v26  ;;  %47 = vst.msk [vmem:[#allocation3 + $0x28] sm:$0xff] %vm2916_vm6, %v2893_v26 }
  0x17   :  { %48 = vst.msk [vmem:[#allocation3 + $0x30] sm:$0xff] %vm2916_vm6, %v2893_v26  ;;  %49 = vst.msk [vmem:[#allocation3 + $0x38] sm:$0xff] %vm2916_vm6, %v2893_v26  ;;  %v2129_v9 = vld [vmem:[#allocation2 + $0x40] sm:$0xff] }
  0x18   :  { %1663 = vmatmul.mubr.msk.f32.gmra.mrb[6].mxu0 %vm94_vm0, %v81_v20  ;;  %1675 = vmatmul.mubr.msk.f32.gmra.mrb[6].mxu1 %vm94_vm0, %v89_v21  ;;  %50 = vst.msk [vmem:[#allocation3 + $0x40] sm:$0xff] %vm2916_vm6, %v2893_v26  ;;  %51 = vst.msk [vmem:[#allocation3 + $0x48] sm:$0xff] %vm2916_vm6, %v2893_v26  ;;  %v2156_v20 = vld [vmem:[#allocation2 + $0x10] sm:$0xff] }
  0x19   :  { %52 = vst.msk [vmem:[#allocation3 + $0x50] sm:$0xff] %vm2916_vm6, %v2893_v26  ;;  %53 = vst.msk [vmem:[#allocation3 + $0x58] sm:$0xff] %vm2916_vm6, %v2893_v26  ;;  %v2163_v25 = vld [vmem:[#allocation2 + $0x50] sm:$0xff] }
  0x1a   :  { %54 = vst.msk [vmem:[#allocation3 + $0x60] sm:$0xff] %vm2916_vm6, %v2893_v26  ;;  %55 = vst.msk [vmem:[#allocation3 + $0x68] sm:$0xff] %vm2916_vm6, %v2893_v26  ;;  %v2204_v46 = vld [vmem:[#allocation2 + $0x70] sm:$0xff] }
  0x1b   :  { %56 = vst.msk [vmem:[#allocation3 + $0x70] sm:$0xff] %vm2916_vm6, %v2893_v26  ;;  %57 = vst.msk [vmem:[#allocation3 + $0x78] sm:$0xff] %vm2916_vm6, %v2893_v26 }
  0x1c   :  { %58 = vst.msk [vmem:[#allocation4] sm:$0xff] %vm2916_vm6, %v2893_v26  ;;  %59 = vst.msk [vmem:[#allocation4 + $0x8] sm:$0xff] %vm2916_vm6, %v2893_v26 }
  0x1d   :  { %60 = vst.msk [vmem:[#allocation4 + $0x10] sm:$0xff] %vm2916_vm6, %v2893_v26  ;;  %61 = vst.msk [vmem:[#allocation4 + $0x18] sm:$0xff] %vm2916_vm6, %v2893_v26 }
  0x1e   :  { %62 = vst.msk [vmem:[#allocation4 + $0x20] sm:$0xff] %vm2916_vm6, %v2893_v26  ;;  %63 = vst.msk [vmem:[#allocation4 + $0x28] sm:$0xff] %vm2916_vm6, %v2893_v26 }
  0x1f   :  { %64 = vst.msk [vmem:[#allocation4 + $0x30] sm:$0xff] %vm2916_vm6, %v2893_v26  ;;  %65 = vst.msk [vmem:[#allocation4 + $0x38] sm:$0xff] %vm2916_vm6, %v2893_v26 }
  0x20   :  { %66 = vst.msk [vmem:[#allocation4 + $0x40] sm:$0xff] %vm2916_vm6, %v2893_v26  ;;  %67 = vst.msk [vmem:[#allocation4 + $0x48] sm:$0xff] %vm2916_vm6, %v2893_v26 }
  0x21   :  { %68 = vst.msk [vmem:[#allocation4 + $0x50] sm:$0xff] %vm2916_vm6, %v2893_v26  ;;  %69 = vst.msk [vmem:[#allocation4 + $0x58] sm:$0xff] %vm2916_vm6, %v2893_v26 }
  0x22   :  { %70 = vst.msk [vmem:[#allocation4 + $0x60] sm:$0xff] %vm2916_vm6, %v2893_v26  ;;  %71 = vst.msk [vmem:[#allocation4 + $0x68] sm:$0xff] %vm2916_vm6, %v2893_v26 }
  0x23   :  { %72 = vst.msk [vmem:[#allocation4 + $0x70] sm:$0xff] %vm2916_vm6, %v2893_v26  ;;  %73 = vst.msk [vmem:[#allocation4 + $0x78] sm:$0xff] %vm2916_vm6, %v2893_v26 }
  0x24   :  { %2947 = vst [vmem:[#allocation8_spill] sm:$0xff] %v2129_v9  ;;  %2949 = vst [vmem:[#allocation10_spill] sm:$0xff] %v2150_v17 }
  0x25   :  { %2951 = vst [vmem:[#allocation12_spill] sm:$0xff] %v2156_v20  ;;  %2953 = vst [vmem:[#allocation14_spill] sm:$0xff] %v2163_v25 }
  0x26   :  { %2963 = vst [vmem:[#allocation24_spill] sm:$0xff] %v2204_v46 }
  0x9f   :  { %v2118_v3 = vpop.xlane.xlu1 %1005 }
  0xdf   :  { %v1655_v29 = vpop.f32.mrb[0].mxu0  ;;  %v1945_v30 = vpop.f32.mrb[0].mxu1 }
  0xe0   :  { %v1947_v31 = vmul.f32 5.0, %v1655_v29  ;;  %v209_v32 = vpop.f32.mrb[1].mxu0  ;;  %v249_v33 = vpop.f32.mrb[1].mxu1  ;;  %v2100_v62 = vmul.f32 5.0, %v1945_v30  ;;  %v2170_v29 = vld [vmem:[#allocation2 + $0x28] sm:$0xff] }
  0xe1   :  { %v1949_v34 = vmul.f32 5.0, %v209_v32  ;;  %v1953_v36 = vmul.f32 5.0, %v249_v33  ;;  %2955 = vst [vmem:[#allocation16_spill] sm:$0xff] %v2170_v29  ;;  %v2177_v33 = vld [vmem:[#allocation2 + $0x60] sm:$0xff] }
  0xe2   :  { %v1036_v35 = vsel %vm972_vm3, %v1947_v31, 0.0  ;;  %2957 = vst [vmem:[#allocation18_spill] sm:$0xff] %v2177_v33 }
  0xe3   :  { %320 = vmax.xlane.f32.xlu0 %v1949_v34  ;;  %1053 = vadd.xlane.f32.xlu1 %v1036_v35  ;;  %v1955_v37 = vpop.f32.mrb[2].mxu0  ;;  %v1957_v38 = vpop.f32.mrb[2].mxu1  ;;  %v1035_v47 = vsel %vm1969_vm5, %v1949_v34, 0.0 }
  0xe4   :  { %v1961_v39 = vpop.f32.mrb[3].mxu0  ;;  %v1963_v40 = vpop.f32.mrb[3].mxu1  ;;  %v2065_v48 = vmul.f32 5.0, %v1955_v37  ;;  %v2104_v63 = vmul.f32 5.0, %v1957_v38  ;;  %v2184_v38 = vld [vmem:[#allocation2 + $0x38] sm:$0xff] }
  0xe5   :  { %v2069_v53 = vmul.f32 5.0, %v1961_v39  ;;  %v2073_v54 = vmul.f32 5.0, %v1963_v40  ;;  %2959 = vst [vmem:[#allocation20_spill] sm:$0xff] %v2184_v38  ;;  %v2191_v40 = vld [vmem:[%s2888_s1] ss:$0 sm:$0xff] }
  0xe7   :  { %322 = vmax.xlane.f32.xlu0 %v1947_v31  ;;  %336 = vmax.xlane.f32.xlu1 %v1953_v36  ;;  %v1973_v42 = vpop.f32.mrb[4].mxu0  ;;  %v1975_v43 = vpop.f32.mrb[4].mxu1 }
  0xe8   :  { %v1977_v44 = vpop.f32.mrb[5].mxu0  ;;  %v1979_v45 = vpop.f32.mrb[5].mxu1  ;;  %v2077_v55 = vmul.f32 5.0, %v1973_v42  ;;  %v2108_v0 = vmul.f32 5.0, %v1975_v43  ;;  %v2196_v43 = vld [vmem:[#allocation2 + $0x30] sm:$0xff] }
  0xe9   :  { %v2084_v57 = vmul.f32 5.0, %v1979_v45  ;;  %v2112_v1 = vmul.f32 5.0, %v1977_v44  ;;  %2961 = vst [vmem:[#allocation22_spill] sm:$0xff] %v2196_v43 }
  0xeb   :  { %1051 = vadd.xlane.f32.xlu1 %v1035_v47  ;;  %v1664_v49 = vpop.f32.mrb[6].mxu0  ;;  %v1676_v50 = vpop.f32.mrb[6].mxu1 }
  0xec   :  { %v239_v51 = vpop.f32.mrb[7].mxu0  ;;  %v279_v52 = vpop.f32.mrb[7].mxu1  ;;  %v2087_v58 = vmul.f32 5.0, %v1664_v49  ;;  %v2115_v2 = vmul.f32 5.0, %v1676_v50 }
  0xed   :  { %v2090_v59 = vmul.f32 5.0, %v239_v51  ;;  %v2093_v60 = vmul.f32 5.0, %v279_v52 }
  0xef   :  { %326 = vmax.xlane.f32.xlu1 %v2065_v48 }
  0xf3   :  { %324 = vmax.xlane.f32.xlu1 %v2069_v53 }
  0xf7   :  { %340 = vmax.xlane.f32.xlu1 %v2073_v54 }
  0xfb   :  { %330 = vmax.xlane.f32.xlu1 %v2077_v55 }
  0xfd   :  { %586 = vperm.xlu0 %1695, %v568_v56  }
  0xff   :  { %344 = vmax.xlane.f32.xlu1 %v2084_v57 }
 0x103   :  { %334 = vmax.xlane.f32.xlu1 %v2087_v58 }
 0x107   :  { %332 = vmax.xlane.f32.xlu1 %v2090_v59 }
 0x10b   :  { %348 = vmax.xlane.f32.xlu1 %v2093_v60 }
 0x11c   :  { %1003 = vadd.xlane.f32.xlu0 %v987_v61 }
 0x120   :  { %338 = vmax.xlane.f32.xlu0 %v2100_v62 }
 0x124   :  { %342 = vmax.xlane.f32.xlu0 %v2104_v63 }
 0x128   :  { %346 = vmax.xlane.f32.xlu0 %v2108_v0 }
 0x12c   :  { %328 = vmax.xlane.f32.xlu0 %v2112_v1 }
 0x130   :  { %350 = vmax.xlane.f32.xlu0 %v2115_v2 }
 0x170   :  { %v321_v5 = vpop.xlane.xlu0 %320  ;;  %v2122_v6 = vpop.xlane.xlu1 %1053 }
 0x171   :  { %v2125_v7 = vmax.f32 %v2120_v4, %v321_v5 }
 0x173   :  { %894 = vst.msk [vmem:[#allocation2] sm:$0xff] %vm2916_vm6, %v2125_v7 }
 0x174   :  { %v323_v11 = vpop.xlane.xlu0 %322  ;;  %v337_v12 = vpop.xlane.xlu1 %336 }
 0x175   :  { %v2136_v13 = vmax.f32 %v2127_v8, %v323_v11  ;;  %v2139_v14 = vmax.f32 %v2129_v9, %v337_v12  ;;  %v2224_v12 = vld [vmem:[#allocation2 + $0x48] sm:$0xff] }
 0x177   :  { %2948 = vst [vmem:[#allocation9_spill] sm:$0xff] %v2139_v14  ;;  %895 = vst.msk [vmem:[#allocation2 + $0x8] sm:$0xff] %vm2916_vm6, %v2136_v13  ;;  %423 = vperm.xlu1 %1696, %v2136_v13  }
 0x178   :  { %902 = vst.msk [vmem:[#allocation2 + $0x40] sm:$0xff] %vm2916_vm6, %v2139_v14  ;;  %v2148_v16 = vpop.xlane.xlu1 %1051 }
 0x179   :  { %v1099_v47 = vsub.f32 %v2148_v16, %v2125_v7 }
 0x17b   :  { %418 = vperm.xlu1 %1696, %v2125_v7   ;;  %v1115_v52 = vmul.f32 1.442695, %v1099_v47 }
 0x17c   :  { %v327_v18 = vpop.xlane.xlu1 %326  ;;  %v587_v41 = vpop.permute.xlu0 %586 }
 0x17d   :  { %v2154_v19 = vmax.f32 %v2150_v17, %v327_v18  ;;  %vm637_vm7 = vcmp.eq.s32.totalorder %v587_v41, %v2191_v40  ;;  %1697 = vpow2.f32 %v1115_v52  ;;  %v569_v18 = vld [vmem:[%s2887_s0 + $0x8] sm:$0xff] }
 0x17e   :  { %vm653_vm8 = vmand %vm637_vm7, %vm549_vm1  ;;  %v2239_v41 = vld [vmem:[#allocation2 + $0x68] sm:$0xff] }
 0x17f   :  { %2950 = vst [vmem:[#allocation11_spill] sm:$0xff] %v2154_v19  ;;  %897 = vst.msk [vmem:[#allocation2 + $0x18] sm:$0xff] %vm2916_vm6, %v2154_v19  ;;  %v1609_v51 = vsel %vm653_vm8, 1.0, %v2893_v26 }
 0x180   :  { %v325_v21 = vpop.xlane.xlu1 %324  ;;  %v733_v56 = vmul.f32 %v1609_v51, %v1949_v34  ;;  %2968 = vst [vmem:[#allocation29_spill] sm:$0xff] %v2239_v41  ;;  %v2250_v51 = vld [vmem:[#allocation2 + $0x20] sm:$0xff] }
 0x181   :  { %v2161_v22 = vmax.f32 %v2156_v20, %v325_v21  ;;  %2970 = vst [vmem:[#allocation31_spill] sm:$0xff] %v2250_v51 }
 0x183   :  { %2952 = vst [vmem:[#allocation13_spill] sm:$0xff] %v2161_v22  ;;  %896 = vst.msk [vmem:[#allocation2 + $0x10] sm:$0xff] %vm2916_vm6, %v2161_v22 }
 0x184   :  { %v341_v27 = vpop.xlane.xlu1 %340 }
 0x185   :  { %v2168_v28 = vmax.f32 %v2163_v25, %v341_v27 }
 0x187   :  { %2954 = vst [vmem:[#allocation15_spill] sm:$0xff] %v2168_v28  ;;  %904 = vst.msk [vmem:[#allocation2 + $0x50] sm:$0xff] %vm2916_vm6, %v2168_v28  ;;  %v1698_v61 = vpop.eup %1697 }
 0x188   :  { %v331_v30 = vpop.xlane.xlu1 %330 }
 0x189   :  { %v2175_v32 = vmax.f32 %v2170_v29, %v331_v30  ;;  %v2232_v30 = vld [vmem:[#allocation2 + $0x58] sm:$0xff] }
 0x18a   :  { %2966 = vst [vmem:[#allocation27_spill] sm:$0xff] %v2232_v30 }
 0x18b   :  { %2956 = vst [vmem:[#allocation17_spill] sm:$0xff] %v2175_v32  ;;  %899 = vst.msk [vmem:[#allocation2 + $0x28] sm:$0xff] %vm2916_vm6, %v2175_v32 }
 0x18c   :  { %v345_v35 = vpop.xlane.xlu1 %344 }
 0x18d   :  { %v2182_v37 = vmax.f32 %v2177_v33, %v345_v35 }
 0x18f   :  { %2958 = vst [vmem:[#allocation19_spill] sm:$0xff] %v2182_v37  ;;  %906 = vst.msk [vmem:[#allocation2 + $0x60] sm:$0xff] %vm2916_vm6, %v2182_v37 }
 0x190   :  { %v335_v39 = vpop.xlane.xlu1 %334 }
 0x191   :  { %v2194_v42 = vmax.f32 %v2184_v38, %v335_v39 }
 0x193   :  { %2960 = vst [vmem:[#allocation21_spill] sm:$0xff] %v2194_v42  ;;  %901 = vst.msk [vmem:[#allocation2 + $0x38] sm:$0xff] %vm2916_vm6, %v2194_v42 }
 0x194   :  { %v333_v44 = vpop.xlane.xlu1 %332 }
 0x195   :  { %v2202_v45 = vmax.f32 %v2196_v43, %v333_v44  ;;  %v571_v44 = vld [vmem:[%s2887_s0 + $0x18] sm:$0xff] }
 0x197   :  { %2962 = vst [vmem:[#allocation23_spill] sm:$0xff] %v2202_v45  ;;  %900 = vst.msk [vmem:[#allocation2 + $0x30] sm:$0xff] %vm2916_vm6, %v2202_v45 }
 0x198   :  { %v349_v49 = vpop.xlane.xlu1 %348 }
 0x199   :  { %v2213_v50 = vmax.f32 %v2204_v46, %v349_v49 }
 0x19b   :  { %2964 = vst [vmem:[#allocation25_spill] sm:$0xff] %v2213_v50  ;;  %908 = vst.msk [vmem:[#allocation2 + $0x70] sm:$0xff] %vm2916_vm6, %v2213_v50 }
 0x19f   :  { %749 = vadd.xlane.f32.xlu1 %v733_v56 }
 0x1a9   :  { %v2219_v5 = vpop.xlane.xlu0 %1003 }
 0x1aa   :  { %v2222_v11 = vmul.f32 %v1698_v61, %v2219_v5  ;;  %v2257_v61 = vld [vmem:[#allocation2 + $0x78] sm:$0xff] }
 0x1ab   :  { %2972 = vst [vmem:[#allocation33_spill] sm:$0xff] %v2257_v61 }
 0x1ad   :  { %v339_v21 = vpop.xlane.xlu0 %338 }
 0x1ae   :  { %v2230_v27 = vmax.f32 %v2224_v12, %v339_v21 }
 0x1b0   :  { %2965 = vst [vmem:[#allocation26_spill] sm:$0xff] %v2230_v27  ;;  %589 = vperm.xlu1 %1696, %v569_v18   ;;  %903 = vst.msk [vmem:[#allocation2 + $0x48] sm:$0xff] %vm2916_vm6, %v2230_v27 }
 0x1b1   :  { %v343_v35 = vpop.xlane.xlu0 %342 }
 0x1b2   :  { %v2237_v39 = vmax.f32 %v2232_v30, %v343_v35 }
 0x1b4   :  { %2967 = vst [vmem:[#allocation28_spill] sm:$0xff] %v2237_v39  ;;  %463 = vperm.xlu1 %1696, %v2230_v27   ;;  %905 = vst.msk [vmem:[#allocation2 + $0x58] sm:$0xff] %vm2916_vm6, %v2237_v39 }
 0x1b5   :  { %v347_v47 = vpop.xlane.xlu0 %346 }
 0x1b6   :  { %v2248_v49 = vmax.f32 %v2239_v41, %v347_v47 }
 0x1b8   :  { %2969 = vst [vmem:[#allocation30_spill] sm:$0xff] %v2248_v49  ;;  %595 = vperm.xlu1 %1696, %v571_v44   ;;  %907 = vst.msk [vmem:[#allocation2 + $0x68] sm:$0xff] %vm2916_vm6, %v2248_v49 }
 0x1b9   :  { %v329_v52 = vpop.xlane.xlu0 %328 }
 0x1ba   :  { %v2255_v56 = vmax.f32 %v2250_v51, %v329_v52 }
 0x1bc   :  { %2971 = vst [vmem:[#allocation32_spill] sm:$0xff] %v2255_v56  ;;  %473 = vperm.xlu1 %1696, %v2237_v39   ;;  %898 = vst.msk [vmem:[#allocation2 + $0x20] sm:$0xff] %vm2916_vm6, %v2255_v56 }
 0x1bd   :  { %v351_v18 = vpop.xlane.xlu0 %350 }
 0x1be   :  { %v2263_v21 = vmax.f32 %v2257_v61, %v351_v18 }
 0x1c0   :  { %2973 = vst [vmem:[#allocation34_spill] sm:$0xff] %v2263_v21  ;;  %428 = vperm.xlu1 %1696, %v2161_v22   ;;  %909 = vst.msk [vmem:[#allocation2 + $0x78] sm:$0xff] %vm2916_vm6, %v2263_v21 }
 0x1c4   :  { %443 = vperm.xlu1 %1696, %v2175_v32  }
 0x1c8   :  { %483 = vperm.xlu1 %1696, %v2248_v49  }
 0x1cc   :  { %438 = vperm.xlu1 %1696, %v2255_v56  }
 0x1d0   :  { %453 = vperm.xlu1 %1696, %v2194_v42  }
 0x1d4   :  { %493 = vperm.xlu1 %1696, %v2263_v21   ;;  %v578_v21 = vld [vmem:[%s2887_s0 + $0x50] sm:$0xff] }
 0x1f6   :  { %v424_v35 = vpop.permute.xlu1 %423 }
 0x1f7   :  { %v497_v44 = vsub.f32 %v1947_v31, %v424_v35  ;;  %v573_v35 = vld [vmem:[%s2887_s0 + $0x28] sm:$0xff] }
 0x1f9   :  { %v514_v47 = vmul.f32 1.442695, %v497_v44 }
 0x1fa   :  { %v419_v52 = vpop.permute.xlu1 %418 }
 0x1fb   :  { %1699 = vpow2.f32 %v514_v47  ;;  %v496_v18 = vsub.f32 %v1949_v34, %v419_v52  ;;  %v575_v34 = vld [vmem:[%s2887_s0 + $0x38] sm:$0xff] }
 0x1fc   :  { %v583_v47 = vld [vmem:[%s2887_s0 + $0x78] sm:$0xff] }
 0x1fd   :  { %v512_v10 = vmul.f32 1.442695, %v496_v18  ;;  %v2974_v18 = vmov 0.0  }
 0x1ff   :  { %1701 = vpow2.f32 %v512_v10  ;;  %v577_v10 = vld [vmem:[%s2887_s0 + $0x48] sm:$0xff] }
 0x205   :  { %v1700_v15 = vpop.eup %1699 }
 0x206   :  { %v553_v26 = vsel %vm549_vm1, %v1700_v15, 0.0  ;;  %v581_v15 = vld [vmem:[%s2887_s0 + $0x68] sm:$0xff] }
 0x207   :  { %703 = vadd.xlane.f32.xlu1 %v553_v26  ;;  %v579_v26 = vld [vmem:[%s2887_s0 + $0x58] sm:$0xff] }
 0x209   :  { %v1702_v46 = vpop.eup %1701 }
 0x20a   :  { %v552_v61 = vsel %vm549_vm1, %v1702_v46, 0.0  ;;  %v846_v46 = vld [vmem:[#allocation4] sm:$0xff] }
 0x20b   :  { %701 = vadd.xlane.f32.xlu1 %v552_v61 }
 0x21c   :  { %601 = vperm.xlu1 %1696, %v573_v35  }
 0x220   :  { %607 = vperm.xlu1 %1696, %v575_v34  }
 0x224   :  { %613 = vperm.xlu1 %1696, %v577_v10   ;;  %v1211_v10 = vmul.f32 %v2148_v16, %v2219_v5  ;;  %v929_v5 = vadd.s32 56, %v1935_v23 }
 0x226   :  { %vm962_vm15 = vcmp.eq.s32.totalorder %v929_v5, %v1937_v24 }
 0x227   :  { %vm2341_vm0 = vmand %vm962_vm15, %vm549_vm1 }
 0x228   :  { %619 = vperm.xlu1 %1696, %v579_v26  }
 0x22c   :  { %625 = vperm.xlu1 %1696, %v581_v15   ;;  %v750_v61 = vpop.xlane.xlu1 %749 }
 0x22d   :  { %v862_v44 = vadd.f32 %v846_v46, %v750_v61  ;;  %v570_v46 = vld [vmem:[%s2887_s0 + $0x10] sm:$0xff]  ;;  %v924_v61 = vadd.s32 16, %v1935_v23 }
 0x22f   :  { %878 = vst.msk [vmem:[#allocation4] sm:$0xff] %vm2916_vm6, %v862_v44  ;;  %v572_v44 = vld [vmem:[%s2887_s0 + $0x20] sm:$0xff]  ;;  %vm957_vm11 = vcmp.eq.s32.totalorder %v924_v61, %v1937_v24  ;;  %v1042_v61 = vsel %vm2341_vm0, %v2087_v58, 0.0 }
 0x230   :  { %631 = vperm.xlu1 %1696, %v583_v47   ;;  %v590_v52 = vpop.permute.xlu1 %589  ;;  %vm2317_vm12 = vmand %vm957_vm11, %vm549_vm1 }
 0x231   :  { %vm638_vm9 = vcmp.eq.s32.totalorder %v590_v52, %v2191_v40  ;;  %v1037_v47 = vsel %vm2317_vm12, %v2069_v53, 0.0 }
 0x232   :  { %vm654_vm10 = vmand %vm638_vm9, %vm549_vm1 }
 0x233   :  { %v1610_v35 = vsel %vm654_vm10, 1.0, %v2974_v18 }
 0x234   :  { %v734_v34 = vmul.f32 %v1610_v35, %v1947_v31  ;;  %v927_v31 = vadd.s32 40, %v1935_v23  ;;  %v931_v35 = vadd.s32 72, %v1935_v23 }
 0x236   :  { %v1195_v26 = vld [vmem:[#allocation4] sm:$0xff]  ;;  %751 = vadd.xlane.f32.xlu0 %v734_v34  ;;  %vm960_vm13 = vcmp.eq.s32.totalorder %v927_v31, %v1937_v24  ;;  %v464_v34 = vpop.permute.xlu1 %463  ;;  %vm964_vm2 = vcmp.eq.s32.totalorder %v931_v35, %v1937_v24  ;;  %v935_v31 = vadd.s32 104, %v1935_v23  ;;  %v2983_v35 = vmov 0 }
 0x237   :  { %v1227_v15 = vsub.f32 %v1195_v26, %v1211_v10  ;;  %vm2329_vm14 = vmand %vm960_vm13, %vm549_vm1 }
 0x238   :  { %v1040_v10 = vsel %vm2329_vm14, %v2077_v55, 0.0  ;;  %vm2354_vm3 = vmand %vm964_vm2, %vm549_vm1  ;;  %vm968_vm7 = vcmp.eq.s32.totalorder %v935_v31, %v1937_v24  ;;  %v2987_v31 = vmov 0 }
 0x239   :  { %1243 = vst.msk [vmem:[#allocation4] sm:$0xff] %vm2916_vm6, %v1227_v15  ;;  %v933_v15 = vadd.s32 88, %v1935_v23  ;;  %vm2378_vm8 = vmand %vm968_vm7, %vm549_vm1 }
 0x23b   :  { %vm966_vm4 = vcmp.eq.s32.totalorder %v933_v15, %v1937_v24  ;;  %v2985_v15 = vmov 0 }
 0x23c   :  { %vm2366_vm5 = vmand %vm966_vm4, %vm549_vm1  ;;  %v2986_v15 = vsel %vm2378_vm8, 4294967295, %v2985_v15 }
 0x23d   :  { %v2984_v35 = vsel %vm2366_vm5, 4294967295, %v2983_v35 }
 0x24c   :  { %592 = vperm.xlu0 %1695, %v570_v46   ;;  %v505_v46 = vsub.f32 %v2100_v62, %v464_v34  ;;  %v937_v34 = vadd.s32 120, %v1935_v23 }
 0x24e   :  { %v530_v5 = vmul.f32 1.442695, %v505_v46  ;;  %vm970_vm9 = vcmp.eq.s32.totalorder %v937_v34, %v1937_v24  ;;  %v2383_v46 = vpop.permute.xlu1 %595 }
 0x24f   :  { %vm2391_vm10 = vmand %vm970_vm9, %vm549_vm1 }
 0x250   :  { %598 = vperm.xlu0 %1695, %v572_v44   ;;  %1703 = vpow2.f32 %v530_v5  ;;  %v2988_v31 = vsel %vm2391_vm10, 4294967295, %v2987_v31  ;;  %v574_v5 = vld [vmem:[%s2887_s0 + $0x30] sm:$0xff] }
 0x254   :  { %1055 = vadd.xlane.f32.xlu1 %v1037_v47  ;;  %458 = vperm.xlu0 %1695, %v2139_v14   ;;  %v1044_v47 = vsel %vm2354_vm3, %v2100_v62, 0.0 }
 0x258   :  { %1061 = vadd.xlane.f32.xlu1 %v1040_v10  ;;  %433 = vperm.xlu0 %1695, %v2154_v19   ;;  %v1046_v10 = vsel %vm2366_vm5, %v2104_v63, 0.0  ;;  %vm3012_vm5 = vcmask 7168  }
 0x25a   :  { %v1704_v34 = vpop.eup %1703 }
 0x25c   :  { %1065 = vadd.xlane.f32.xlu1 %v1042_v61  ;;  %468 = vperm.xlu0 %1695, %v2168_v28   ;;  %v1048_v61 = vsel %vm2378_vm8, %v2108_v0, 0.0 }
 0x260   :  { %1069 = vadd.xlane.f32.xlu1 %v1044_v47  ;;  %478 = vperm.xlu0 %1695, %v2182_v37   ;;  %v1050_v47 = vsel %vm2391_vm10, %v2115_v2, 0.0 }
 0x264   :  { %1073 = vadd.xlane.f32.xlu1 %v1046_v10  ;;  %448 = vperm.xlu0 %1695, %v2202_v45   ;;  %v2401_v10 = vpop.permute.xlu1 %473 }
 0x268   :  { %1077 = vadd.xlane.f32.xlu1 %v1048_v61  ;;  %488 = vperm.xlu0 %1695, %v2213_v50   ;;  %v576_v61 = vld [vmem:[%s2887_s0 + $0x40] sm:$0xff]  ;;  %v561_v50 = vsel %vm549_vm1, %v1704_v34, 0.0  ;;  %v2411_v43 = vpop.permute.xlu1 %428  ;;  %v582_v34 = vld [vmem:[%s2887_s0 + $0x70] sm:$0xff] }
 0x26c   :  { %1081 = vadd.xlane.f32.xlu1 %v1050_v47  ;;  %604 = vperm.xlu0 %1695, %v574_v5   ;;  %v580_v5 = vld [vmem:[%s2887_s0 + $0x60] sm:$0xff]  ;;  %v2416_v47 = vpop.permute.xlu1 %443 }
 0x270   :  { %610 = vperm.xlu0 %1695, %v576_v61   ;;  %719 = vadd.xlane.f32.xlu1 %v561_v50  ;;  %v2421_v50 = vpop.permute.xlu1 %483  ;;  %v2989_v61 = vsub.f32 %v2127_v8, %v2136_v13  ;;  %v782_v8 = vld [vmem:[#allocation3 + $0x8] sm:$0xff] }
 0x272   :  { %v386_v45 = vmul.f32 1.442695, %v2989_v61  ;;  %v925_v61 = vadd.s32 24, %v1935_v23 }
 0x274   :  { %616 = vperm.xlu0 %1695, %v578_v21   ;;  %v2426_v38 = vpop.permute.xlu1 %438  ;;  %v2990_v21 = vsub.f32 %v2120_v4, %v2125_v7  ;;  %1705 = vpow2.f32 %v386_v45  ;;  %v781_v4 = vld [vmem:[#allocation3] sm:$0xff]  ;;  %vm958_vm11 = vcmp.eq.s32.totalorder %v925_v61, %v1937_v24  ;;  %v926_v7 = vadd.s32 32, %v1935_v23 }
 0x275   :  { %vm2443_vm13 = vmand %vm958_vm11, %vm549_vm1 }
 0x276   :  { %v384_v42 = vmul.f32 1.442695, %v2990_v21  ;;  %vm959_vm15 = vcmp.eq.s32.totalorder %v926_v7, %v1937_v24 }
 0x277   :  { %vm2455_vm2 = vmand %vm959_vm15, %vm549_vm1 }
 0x278   :  { %622 = vperm.xlu0 %1695, %v580_v5   ;;  %v1100_v5 = vsub.f32 %v2122_v6, %v2136_v13  ;;  %1707 = vpow2.f32 %v384_v42  ;;  %v2433_v41 = vpop.permute.xlu1 %453 }
 0x27c   :  { %628 = vperm.xlu0 %1695, %v582_v34   ;;  %v1117_v34 = vmul.f32 1.442695, %v1100_v5  ;;  %v2435_v33 = vpop.permute.xlu1 %493 }
 0x27e   :  { %v1706_v49 = vpop.eup %1705  ;;  %1709 = vpow2.f32 %v1117_v34 }
 0x27f   :  { %v798_v37 = vmul.f32 %v1706_v49, %v782_v8  ;;  %v928_v49 = vadd.s32 48, %v1935_v23 }
 0x281   :  { %vm961_vm4 = vcmp.eq.s32.totalorder %v928_v49, %v1937_v24 }
 0x282   :  { %v1708_v51 = vpop.eup %1707  ;;  %vm2467_vm7 = vmand %vm961_vm4, %vm549_vm1 }
 0x283   :  { %v797_v42 = vmul.f32 %v1708_v51, %v781_v4  ;;  %v1039_v4 = vsel %vm2455_vm2, %v2112_v1, 0.0  ;;  %v1041_v49 = vsel %vm2467_vm7, %v2090_v59, 0.0  ;;  %v993_v16 = vsel %vm2467_vm7, 1.0, %v2974_v18 }
 0x284   :  { %vm3044_vm7 = vcmask 7168  }
 0x288   :  { %v1710_v34 = vpop.eup %1709 }
 0x289   :  { %v1148_v8 = vmul.f32 %v1710_v34, %v2118_v3  ;;  %v2997_v34 = vmov 0 }
 0x294   :  { %v704_v56 = vpop.xlane.xlu1 %703 }
 0x295   :  { %v814_v13 = vadd.f32 %v798_v37, %v704_v56  ;;  %v1038_v37 = vsel %vm2443_vm13, %v2065_v48, 0.0  ;;  %v930_v56 = vadd.s32 64, %v1935_v23 }
 0x297   :  { %831 = vst.msk [vmem:[#allocation3 + $0x8] sm:$0xff] %vm2916_vm6, %v814_v13  ;;  %vm963_vm9 = vcmp.eq.s32.totalorder %v930_v56, %v1937_v24 }
 0x298   :  { %v702_v21 = vpop.xlane.xlu1 %701  ;;  %vm2480_vm11 = vmand %vm963_vm9, %vm549_vm1 }
 0x299   :  { %v813_v5 = vadd.f32 %v797_v42, %v702_v21  ;;  %v932_v42 = vadd.s32 80, %v1935_v23  ;;  %v2998_v34 = vsel %vm2480_vm11, 4294967295, %v2997_v34  ;;  %v1043_v56 = vsel %vm2480_vm11, %v1953_v36, 0.0 }
 0x29b   :  { %830 = vst.msk [vmem:[#allocation3] sm:$0xff] %vm2916_vm6, %v813_v5  ;;  %1057 = vadd.xlane.f32.xlu0 %v1038_v37  ;;  %vm965_vm15 = vcmp.eq.s32.totalorder %v932_v42, %v1937_v24  ;;  %v934_v37 = vadd.s32 96, %v1935_v23 }
 0x29c   :  { %vm2492_vm4 = vmand %vm965_vm15, %vm549_vm1 }
 0x29d   :  { %vm967_vm9 = vcmp.eq.s32.totalorder %v934_v37, %v1937_v24 }
 0x29e   :  { %v1084_v61 = vld [vmem:[#allocation3 + $0x8] sm:$0xff] }
 0x29f   :  { %v1164_v7 = vsub.f32 %v1084_v61, %v1148_v8  ;;  %1059 = vadd.xlane.f32.xlu0 %v1039_v4  ;;  %v936_v8 = vadd.s32 112, %v1935_v23  ;;  %v1045_v61 = vsel %vm2492_vm4, %v2073_v54, 0.0  ;;  %v3001_v4 = vmov 0 }
 0x2a0   :  { %v3003_v23 = vmov 0 }
 0x2a1   :  { %1180 = vst.msk [vmem:[#allocation3 + $0x8] sm:$0xff] %vm2916_vm6, %v1164_v7  ;;  %vm969_vm15 = vcmp.eq.s32.totalorder %v936_v8, %v1937_v24  ;;  %v992_v24 = vsel %vm2329_vm14, 1.0, %v2974_v18  ;;  %vm3015_vm14 = vnez %v2986_v15 }
 0x2a2   :  { %v1083_v21 = vld [vmem:[#allocation3] sm:$0xff]  ;;  %vm2513_vm10 = vmand %vm969_vm15, %vm549_vm1  ;;  %v1000_v44 = vsel %vm3015_vm14, 1.0, %v2974_v18 }
 0x2a3   :  { %v1163_v5 = vsub.f32 %v1083_v21, %v2222_v11  ;;  %1063 = vadd.xlane.f32.xlu0 %v1041_v49  ;;  %v2999_v11 = vmov 0  ;;  %v3004_v23 = vsel %vm2513_vm10, 4294967295, %v3003_v23  ;;  %v1049_v42 = vsel %vm2513_vm10, %v2093_v60, 0.0  ;;  %v2520_v21 = vpop.permute.xlu1 %601  ;;  %v847_v49 = vld [vmem:[#allocation4 + $0x8] sm:$0xff] }
 0x2a4   :  { %v3000_v11 = vsel %vm2492_vm4, 4294967295, %v2999_v11 }
 0x2a5   :  { %1179 = vst.msk [vmem:[#allocation3] sm:$0xff] %vm2916_vm6, %v1163_v5  ;;  %vm2503_vm6 = vmand %vm967_vm9, %vm549_vm1  ;;  %vm3005_vm9 = vcmask 7168  }
 0x2a6   :  { %v3002_v4 = vsel %vm2503_vm6, 4294967295, %v3001_v4  ;;  %v1047_v7 = vsel %vm2503_vm6, %v2084_v57, 0.0  ;;  %vm3006_vm15 = vmmov %vm3005_vm9  ;;  %vm642_vm6 = vcmp.eq.s32.totalorder %v2520_v21, %v2191_v40 }
 0x2a7   :  { %1067 = vadd.xlane.f32.xlu0 %v1043_v56  ;;  %v2522_v56 = vpop.permute.xlu1 %607  ;;  %vm3009_vm8 = vmmov %vm3006_vm15 }
 0x2a8   :  { %v1295_v29 = vld [vmem:[#allocation3 + $0x8] sm:$0xff] }
 0x2a9   :  { %1711 = vlog2.f32 %v1295_v29 }
 0x2ab   :  { %1071 = vadd.xlane.f32.xlu0 %v1045_v61  ;;  %v2525_v8 = vpop.permute.xlu1 %613 }
 0x2ac   :  { %v1294_v30 = vld [vmem:[#allocation3] sm:$0xff] }
 0x2ad   :  { %1713 = vlog2.f32 %v1294_v30 }
 0x2af   :  { %1075 = vadd.xlane.f32.xlu0 %v1047_v7  ;;  %v1212_v7 = vmul.f32 %v2122_v6, %v2118_v3  ;;  %v507_v3 = vsub.f32 %v2104_v63, %v2401_v10 }
 0x2b3   :  { %1079 = vadd.xlane.f32.xlu0 %v1049_v42 }
 0x2c3   :  { %v752_v5 = vpop.xlane.xlu0 %751 }
 0x2c4   :  { %v863_v37 = vadd.f32 %v847_v49, %v752_v5  ;;  %v2534_v49 = vpop.permute.xlu1 %619  ;;  %v498_v5 = vsub.f32 %v2069_v53, %v2411_v43  ;;  %v534_v43 = vmul.f32 1.442695, %v507_v3 }
 0x2c6   :  { %879 = vst.msk [vmem:[#allocation4 + $0x8] sm:$0xff] %vm3005_vm9, %v863_v37  ;;  %v516_v6 = vmul.f32 1.442695, %v498_v5  ;;  %vm640_vm9 = vcmp.eq.s32.totalorder %v2383_v46, %v2191_v40 }
 0x2c7   :  { %vm656_vm10 = vmand %vm640_vm9, %vm549_vm1  ;;  %vm644_vm9 = vcmp.eq.s32.totalorder %v2522_v56, %v2191_v40 }
 0x2c8   :  { %v2543_v29 = vpop.permute.xlu1 %625 }
 0x2cb   :  { %v2527_v61 = vpop.permute.xlu0 %592 }
 0x2cc   :  { %v2551_v17 = vpop.permute.xlu1 %631  ;;  %vm639_vm4 = vcmp.eq.s32.totalorder %v2527_v61, %v2191_v40 }
 0x2cd   :  { %v1196_v32 = vld [vmem:[#allocation4 + $0x8] sm:$0xff] }
 0x2ce   :  { %v1228_v42 = vsub.f32 %v1196_v32, %v1212_v7  ;;  %v501_v32 = vsub.f32 %v2077_v55, %v2416_v47 }
 0x2cf   :  { %v2531_v39 = vpop.permute.xlu0 %598 }
 0x2d0   :  { %1244 = vst.msk [vmem:[#allocation4 + $0x8] sm:$0xff] %vm3006_vm15, %v1228_v42  ;;  %v1712_v42 = vpop.eup %1711  ;;  %v522_v10 = vmul.f32 1.442695, %v501_v32  ;;  %v1279_v32 = vld [vmem:[#allocation2 + $0x8] sm:$0xff] }
 0x2d1   :  { %v1714_v20 = vpop.eup %1713 }
 0x2d3   :  { %v459_v37 = vpop.permute.xlu0 %458 }
 0x2d4   :  { %v504_v25 = vsub.f32 %v1953_v36, %v459_v37  ;;  %v500_v37 = vsub.f32 %v2112_v1, %v2426_v38 }
 0x2d6   :  { %v528_v28 = vmul.f32 1.442695, %v504_v25  ;;  %v509_v25 = vsub.f32 %v2108_v0, %v2421_v50  ;;  %v520_v19 = vmul.f32 1.442695, %v500_v37  ;;  %v1263_v50 = vld [vmem:[%s2889_s2 + $0x8] sm:$0xff] }
 0x2d7   :  { %v434_v7 = vpop.permute.xlu0 %433 }
 0x2d8   :  { %1715 = vpow2.f32 %v528_v28  ;;  %v499_v30 = vsub.f32 %v2065_v48, %v434_v7  ;;  %v1311_v28 = vmul.f32 0.6931472, %v1714_v20  ;;  %v1313_v7 = vmul.f32 0.6931472, %v1712_v42  ;;  %v1262_v42 = vld [vmem:[%s2889_s2] sm:$0xff]  ;;  %s1828_s2 = smov [#allocation5]  }
 0x2d9   :  { %1717 = vpow2.f32 %v516_v6  ;;  %v538_v9 = vmul.f32 1.442695, %v509_v25  ;;  %s1584_s13 = sshll.u32 %s1828_s2, 4  ;;  %s1585_s13 = int_to_ptr.vmem [resolvable:$true] %s1584_s13 }
 0x2da   :  { %v518_v22 = vmul.f32 1.442695, %v499_v30  ;;  %v503_v30 = vsub.f32 %v2087_v58, %v2433_v41  ;;  %v1343_v37 = vadd.f32 %v1313_v7, %v1279_v32  ;;  %s1801_s15 = scalar_lea.vmem %s1585_s13, 128  ;;  %p1806_p1 = scmp.lt.s32.totalorder %s1585_s13, %s1585_s13 }
 0x2db   :  { %v469_v5 = vpop.permute.xlu0 %468  ;;  %p1802_p0 = scmp.ne.s32.totalorder %s1585_s13, %s1801_s15  ;;  %p1807_p2 = scmp.lt.s32.totalorder %s1801_s15, %s1801_s15 }
 0x2dc   :  { %1719 = vpow2.f32 %v518_v22  ;;  %v506_v47 = vsub.f32 %v2073_v54, %v469_v5  ;;  %v1278_v22 = vld [vmem:[#allocation2] sm:$0xff]  ;;  %v526_v41 = vmul.f32 1.442695, %v503_v30 }
 0x2dd   :  { %1721 = vpow2.f32 %v534_v43  ;;  %v1342_v43 = vadd.f32 %v1311_v28, %v1278_v22  ;;  %v1359_v28 = vadd.f32 0.001, %v1343_v37  ;;  %v377_v22 = vsub.f32 %v2224_v12, %v2230_v27  ;;  %p1808_p3 = por %p1807_p2, %p1806_p1 }
 0x2de   :  { %v532_v3 = vmul.f32 1.442695, %v506_v47  ;;  %1723 = vpow2.f32 %v522_v10 }
 0x2df   :  { %v479_v6 = vpop.permute.xlu0 %478  ;;  %v1358_v14 = vadd.f32 0.001, %v1342_v43  ;;  %v1375_v43 = vld [vmem:[#allocation4 + $0x8] sm:$0xff]  ;;  %p1809_p4 = pnand %p1808_p3, %p1802_p0 }
 0x2e0   :  { %1725 = vpow2.f32 %v532_v3  ;;  %v508_v38 = vsub.f32 %v2084_v57, %v479_v6 }
 0x2e1   :  { %v2559_v20 = vpop.xlane.xlu1 %1055  ;;  %1727 = vrcp.f32 %v1263_v50 }
 0x2e2   :  { %3007 = vst [vmem:[#allocation35_spill] sm:$0xff] %v2559_v20  ;;  %v1716_v10 = vpop.eup %1715  ;;  %1729 = vpow2.f32 %v520_v19  ;;  %v536_v5 = vmul.f32 1.442695, %v508_v38  ;;  %v511_v19 = vsub.f32 %v2115_v2, %v2435_v33  ;;  %v1390_v33 = vmul.f32 %v1358_v14, %v1262_v42 }
 0x2e3   :  { %v449_v25 = vpop.permute.xlu0 %448  ;;  %v560_v47 = vsel %vm549_vm1, %v1716_v10, 0.0  ;;  %v1718_v3 = vpop.eup %1717  ;;  %1731 = vrcp.f32 %v1262_v42 }
 0x2e4   :  { %v502_v6 = vsub.f32 %v2090_v59, %v449_v25  ;;  %717 = vadd.xlane.f32.xlu0 %v560_v47  ;;  %1733 = vpow2.f32 %v538_v9  ;;  %v554_v9 = vsel %vm549_vm1, %v1718_v3, 0.0 }
 0x2e5   :  { %v2567_v20 = vpop.xlane.xlu1 %1061  ;;  %1735 = vpow2.f32 %v536_v5  ;;  %v1391_v5 = vmul.f32 %v1359_v28, %v1263_v50 }
 0x2e6   :  { %3008 = vst [vmem:[#allocation36_spill] sm:$0xff] %v2567_v20  ;;  %v1720_v7 = vpop.eup %1719  ;;  %v524_v38 = vmul.f32 1.442695, %v502_v6  ;;  %1737 = vpow2.f32 %v526_v41  ;;  %v542_v6 = vmul.f32 1.442695, %v511_v19  ;;  %v1374_v41 = vld [vmem:[#allocation4] sm:$0xff] }
 0x2e7   :  { %v489_v32 = vpop.permute.xlu0 %488  ;;  %v555_v10 = vsel %vm549_vm1, %v1720_v7, 0.0  ;;  %v1722_v30 = vpop.eup %1721  ;;  %v402_v7 = vmul.f32 1.442695, %v377_v22  ;;  %v1406_v50 = vsub.f32 %v1374_v41, %v1390_v33 }
 0x2e8   :  { %707 = vadd.xlane.f32.xlu1 %v555_v10  ;;  %705 = vadd.xlane.f32.xlu0 %v554_v9  ;;  %v1724_v37 = vpop.eup %1723  ;;  %1739 = vpow2.f32 %v524_v38  ;;  %v510_v12 = vsub.f32 %v2093_v60, %v489_v32  ;;  %v563_v3 = vsel %vm549_vm1, %v1722_v30, 0.0  ;;  %v1407_v9 = vsub.f32 %v1375_v43, %v1391_v5 }
 0x2e9   :  { %v2577_v25 = vpop.xlane.xlu1 %1065  ;;  %1741 = vpow2.f32 %v542_v6  ;;  %v557_v38 = vsel %vm549_vm1, %v1724_v37, 0.0 }
 0x2ea   :  { %v1726_v47 = vpop.eup %1725  ;;  %v540_v28 = vmul.f32 1.442695, %v510_v12  ;;  %1743 = vpow2.f32 %v402_v7 }
 0x2eb   :  { %v1728_v27 = vpop.eup %1727  ;;  %v562_v10 = vsel %vm549_vm1, %v1726_v47, 0.0  ;;  %v605_v7 = vpop.permute.xlu0 %604 }
 0x2ec   :  { %v1730_v20 = vpop.eup %1729  ;;  %723 = vadd.xlane.f32.xlu1 %v563_v3  ;;  %721 = vadd.xlane.f32.xlu0 %v562_v10  ;;  %v1425_v32 = vmul.f32 %v1728_v27, %v1407_v9  ;;  %1745 = vpow2.f32 %v540_v28  ;;  %v790_v28 = vld [vmem:[#allocation3 + $0x48] sm:$0xff] }
 0x2ed   :  { %v2584_v14 = vpop.xlane.xlu1 %1069  ;;  %v1732_v42 = vpop.eup %1731  ;;  %v556_v22 = vsel %vm549_vm1, %v1730_v20, 0.0 }
 0x2ee   :  { %v1734_v19 = vpop.eup %1733  ;;  %v1423_v5 = vmul.f32 %v1732_v42, %v1406_v50  ;;  %v1455_v12 = vmul.f32 -1.0, %v1425_v32 }
 0x2ef   :  { %v1736_v30 = vpop.eup %1735  ;;  %v565_v47 = vsel %vm549_vm1, %v1734_v19, 0.0  ;;  %v611_v61 = vpop.permute.xlu0 %610 }
 0x2f0   :  { %711 = vadd.xlane.f32.xlu1 %v557_v38  ;;  %709 = vadd.xlane.f32.xlu0 %v556_v22  ;;  %v1738_v33 = vpop.eup %1737  ;;  %v564_v6 = vsel %vm549_vm1, %v1736_v30, 0.0  ;;  %v1454_v20 = vmul.f32 -1.0, %v1423_v5  ;;  %v1537_v9 = vsel %vm3006_vm15, %v1455_v12, 0.0  ;;  %vm2616_vm15 = vmand %vm642_vm6, %vm549_vm1  ;;  %v1612_v22 = vsel %vm656_vm10, 1.0, %v2974_v18 }
 0x2f1   :  { %v2590_v43 = vpop.xlane.xlu1 %1073  ;;  %v559_v10 = vsel %vm549_vm1, %v1738_v33, 0.0  ;;  %vm641_vm6 = vcmp.eq.s32.totalorder %v2531_v39, %v2191_v40  ;;  %vm660_vm10 = vmand %vm644_vm9, %vm549_vm1  ;;  %vm643_vm9 = vcmp.eq.s32.totalorder %v605_v7, %v2191_v40 }
 0x2f2   :  { %v1740_v37 = vpop.eup %1739  ;;  %v1536_v42 = vsel %vm3009_vm8, %v1454_v20, 0.0  ;;  %vm655_vm8 = vmand %vm639_vm4, %vm549_vm1  ;;  %vm646_vm4 = vcmp.eq.s32.totalorder %v2525_v8, %v2191_v40  ;;  %v1616_v20 = vsel %vm660_vm10, 1.0, %v2974_v18 }
 0x2f3   :  { %v558_v3 = vsel %vm549_vm1, %v1740_v37, 0.0  ;;  %v1742_v41 = vpop.eup %1741  ;;  %v1538_v19 = vadd.f32 %v1537_v9, %v1536_v42  ;;  %v1611_v12 = vsel %vm655_vm8, 1.0, %v2974_v18  ;;  %vm657_vm11 = vmand %vm641_vm6, %vm549_vm1  ;;  %vm648_vm8 = vcmp.eq.s32.totalorder %v2534_v49, %v2191_v40 }
 0x2f4   :  { %727 = vadd.xlane.f32.xlu1 %v565_v47  ;;  %725 = vadd.xlane.f32.xlu0 %v564_v6  ;;  %v1744_v46 = vpop.eup %1743  ;;  %v567_v21 = vsel %vm549_vm1, %v1742_v41, 0.0  ;;  %v736_v47 = vmul.f32 %v1612_v22, %v2065_v48  ;;  %v1614_v6 = vsel %vm2616_vm15, 1.0, %v2974_v18  ;;  %v617_v48 = vpop.permute.xlu0 %616  ;;  %v735_v37 = vmul.f32 %v1611_v12, %v2069_v53  ;;  %vm662_vm15 = vmand %vm646_vm4, %vm549_vm1  ;;  %v3027_v12 = vld [vmem:[#allocation14_spill] sm:$0xff] }
 0x2f5   :  { %v2598_v27 = vpop.xlane.xlu1 %1077  ;;  %v806_v30 = vmul.f32 %v1744_v46, %v790_v28  ;;  %v738_v39 = vmul.f32 %v1614_v6, %v2077_v55  ;;  %v1613_v8 = vsel %vm657_vm11, 1.0, %v2974_v18  ;;  %vm645_vm6 = vcmp.eq.s32.totalorder %v611_v61, %v2191_v40  ;;  %vm664_vm10 = vmand %vm648_vm8, %vm549_vm1  ;;  %v3023_v61 = vld [vmem:[#allocation10_spill] sm:$0xff]  ;;  %v3026_v6 = vld [vmem:[#allocation15_spill] sm:$0xff] }
 0x2f6   :  { %v1746_v32 = vpop.eup %1745  ;;  %v740_v55 = vmul.f32 %v1616_v20, %v2087_v58  ;;  %v737_v53 = vmul.f32 %v1613_v8, %v2112_v1  ;;  %v1618_v7 = vsel %vm662_vm15, 1.0, %v2974_v18  ;;  %vm650_vm11 = vcmp.eq.s32.totalorder %v2543_v29, %v2191_v40  ;;  %vm661_vm4 = vmand %vm645_vm6, %vm549_vm1  ;;  %v3029_v20 = vld [vmem:[#allocation27_spill] sm:$0xff] }
 0x2f7   :  { %v566_v56 = vsel %vm549_vm1, %v1746_v32, 0.0  ;;  %v742_v58 = vmul.f32 %v1618_v7, %v2100_v62  ;;  %vm666_vm15 = vmand %vm650_vm11, %vm549_vm1  ;;  %v1617_v9 = vsel %vm661_vm4, 1.0, %v2974_v18  ;;  %vm652_vm8 = vcmp.eq.s32.totalorder %v2551_v17, %v2191_v40  ;;  %v3031_v7 = vld [vmem:[#allocation16_spill] sm:$0xff] }
 0x2f8   :  { %713 = vadd.xlane.f32.xlu0 %v558_v3  ;;  %715 = vadd.xlane.f32.xlu1 %v559_v10  ;;  %v623_v49 = vpop.permute.xlu0 %622  ;;  %v1620_v10 = vsel %vm664_vm10, 1.0, %v2974_v18  ;;  %v741_v29 = vmul.f32 %v1617_v9, %v1953_v36  ;;  %v1622_v41 = vsel %vm666_vm15, 1.0, %v2974_v18  ;;  %vm668_vm10 = vmand %vm652_vm8, %vm549_vm1 }
 0x2f9   :  { %v2611_v50 = vpop.xlane.xlu1 %1081  ;;  %vm649_vm6 = vcmp.eq.s32.totalorder %v623_v49, %v2191_v40  ;;  %v744_v62 = vmul.f32 %v1620_v10, %v2104_v63  ;;  %v746_v17 = vmul.f32 %v1622_v41, %v2108_v0  ;;  %v1624_v36 = vsel %vm668_vm10, 1.0, %v2974_v18  ;;  %vm3047_vm15 = vmmov %vm3044_vm7 }
 0x2fa   :  { %vm665_vm11 = vmand %vm649_vm6, %vm549_vm1  ;;  %v748_v28 = vmul.f32 %v1624_v36, %v2115_v2  ;;  %v994_v2 = vsel %vm2341_vm0, 1.0, %v2974_v18  ;;  %vm3016_vm0 = vnez %v3000_v11 }
 0x2fb   :  { %v1621_v42 = vsel %vm665_vm11, 1.0, %v2974_v18  ;;  %v997_v45 = vsel %vm3016_vm0, 1.0, %v2974_v18  ;;  %vm3048_vm8 = vmmov %vm3044_vm7 }
 0x2fc   :  { %731 = vadd.xlane.f32.xlu1 %v567_v21  ;;  %1567 = vadd.xlane.f32.xlu0 %v1538_v19  ;;  %v745_v19 = vmul.f32 %v1621_v42, %v2084_v57  ;;  %v989_v57 = vsel %vm2317_vm12, 1.0, %v2974_v18  ;;  %vm3014_vm12 = vnez %v2998_v34  ;;  %v3020_v21 = vld [vmem:[#allocation9_spill] sm:$0xff] }
 0x2fd   :  { %v720_v5 = vpop.xlane.xlu1 %719  ;;  %v995_v26 = vsel %vm3014_vm12, 1.0, %v2974_v18 }
 0x2fe   :  { %v822_v33 = vadd.f32 %v806_v30, %v720_v5 }
 0x300   :  { %839 = vst.msk [vmem:[#allocation3 + $0x48] sm:$0xff] %vm3012_vm5, %v822_v33  ;;  %755 = vadd.xlane.f32.xlu1 %v736_v47  ;;  %729 = vadd.xlane.f32.xlu0 %v566_v56  ;;  %vm659_vm5 = vmand %vm643_vm9, %vm549_vm1  ;;  %vm647_vm9 = vcmp.eq.s32.totalorder %v617_v48, %v2191_v40  ;;  %v3024_v33 = vld [vmem:[#allocation13_spill] sm:$0xff]  ;;  %v3025_v47 = vld [vmem:[#allocation12_spill] sm:$0xff]  ;;  %v378_v48 = vsub.f32 %v3027_v12, %v3026_v6 }
 0x301   :  { %v1615_v3 = vsel %vm659_vm5, 1.0, %v2974_v18  ;;  %vm663_vm5 = vmand %vm647_vm9, %vm549_vm1 }
 0x302   :  { %v739_v1 = vmul.f32 %v1615_v3, %v2090_v59  ;;  %v629_v59 = vpop.permute.xlu0 %628  ;;  %v1619_v46 = vsel %vm663_vm5, 1.0, %v2974_v18  ;;  %vm3049_vm5 = vmmov %vm3044_vm7 }
 0x303   :  { %vm651_vm4 = vcmp.eq.s32.totalorder %v629_v59, %v2191_v40  ;;  %v743_v63 = vmul.f32 %v1619_v46, %v2073_v54  ;;  %v990_v54 = vsel %vm2443_vm13, 1.0, %v2974_v18  ;;  %v996_v40 = vsel %vm2354_vm3, 1.0, %v2974_v18  ;;  %v3034_v59 = vld [vmem:[#allocation19_spill] sm:$0xff]  ;;  %v3036_v46 = vld [vmem:[#allocation30_spill] sm:$0xff]  ;;  %vm3050_vm6 = vmmov %vm3049_vm5 }
 0x304   :  { %759 = vadd.xlane.f32.xlu1 %v738_v39  ;;  %753 = vadd.xlane.f32.xlu0 %v735_v37  ;;  %vm667_vm9 = vmand %vm651_vm4, %vm549_vm1  ;;  %vm3013_vm1 = vnez %v2984_v35  ;;  %vm3017_vm3 = vnez %v2988_v31  ;;  %vm3018_vm13 = vnez %v3002_v4  ;;  %v3021_v31 = vld [vmem:[#allocation8_spill] sm:$0xff]  ;;  %v3022_v4 = vld [vmem:[#allocation11_spill] sm:$0xff] }
 0x305   :  { %v1623_v38 = vsel %vm667_vm9, 1.0, %v2974_v18  ;;  %v998_v52 = vsel %vm3013_vm1, 1.0, %v2974_v18  ;;  %v1002_v35 = vsel %vm3017_vm3, 1.0, %v2974_v18  ;;  %v999_v51 = vsel %vm3018_vm13, 1.0, %v2974_v18  ;;  %v3028_v37 = vld [vmem:[#allocation28_spill] sm:$0xff]  ;;  %vm3051_vm10 = vmmov %vm3049_vm5 }
 0x306   :  { %v747_v0 = vmul.f32 %v1623_v38, %v2093_v60  ;;  %v991_v60 = vsel %vm2455_vm2, 1.0, %v2974_v18  ;;  %vm3019_vm2 = vnez %v3004_v23  ;;  %v376_v22 = vsub.f32 %v3021_v31, %v3020_v21  ;;  %v3042_v31 = vld [vmem:[#allocation34_spill] sm:$0xff]  ;;  %vm3052_vm11 = vmmov %vm3049_vm5 }
 0x307   :  { %v1001_v15 = vsel %vm3019_vm2, 1.0, %v2974_v18  ;;  %v371_v30 = vsub.f32 %v3023_v61, %v3022_v4  ;;  %v370_v23 = vsub.f32 %v3025_v47, %v3024_v33  ;;  %v379_v8 = vsub.f32 %v3029_v20, %v3028_v37  ;;  %v792_v20 = vld [vmem:[#allocation3 + $0x58] sm:$0xff]  ;;  %vm3053_vm4 = vmmov %vm3049_vm5 }
 0x308   :  { %763 = vadd.xlane.f32.xlu1 %v740_v55  ;;  %757 = vadd.xlane.f32.xlu0 %v737_v53  ;;  %v400_v5 = vmul.f32 1.442695, %v376_v22  ;;  %v404_v55 = vmul.f32 1.442695, %v378_v48  ;;  %v3030_v53 = vld [vmem:[#allocation17_spill] sm:$0xff]  ;;  %vm3054_vm9 = vmmov %vm3053_vm4 }
 0x309   :  { %v390_v56 = vmul.f32 1.442695, %v371_v30  ;;  %v388_v39 = vmul.f32 1.442695, %v370_v23  ;;  %v373_v3 = vsub.f32 %v3031_v7, %v3030_v53  ;;  %v406_v49 = vmul.f32 1.442695, %v379_v8  ;;  %vm3055_vm1 = vmmov %vm3053_vm4 }
 0x30a   :  { %1747 = vpow2.f32 %v400_v5  ;;  %v3043_v22 = vld [vmem:[#allocation33_spill] sm:$0xff]  ;;  %vm3056_vm12 = vmmov %vm3055_vm1 }
 0x30b   :  { %1749 = vpow2.f32 %v390_v56  ;;  %v383_v61 = vsub.f32 %v3043_v22, %v3042_v31  ;;  %vm3057_vm14 = vmmov %vm3055_vm1 }
 0x30c   :  { %767 = vadd.xlane.f32.xlu1 %v742_v58  ;;  %761 = vadd.xlane.f32.xlu0 %v739_v1  ;;  %1751 = vpow2.f32 %v388_v39  ;;  %v3032_v58 = vld [vmem:[#allocation32_spill] sm:$0xff]  ;;  %v3033_v1 = vld [vmem:[#allocation31_spill] sm:$0xff]  ;;  %v791_v39 = vld [vmem:[#allocation3 + $0x50] sm:$0xff] }
 0x30d   :  { %v372_v10 = vsub.f32 %v3033_v1, %v3032_v58  ;;  %1753 = vpow2.f32 %v404_v55  ;;  %v414_v7 = vmul.f32 1.442695, %v383_v61  ;;  %vm3058_vm0 = vmmov %vm3055_vm1 }
 0x30e   :  { %1755 = vpow2.f32 %v406_v49  ;;  %v3046_v49 = vld [vmem:[#allocation24_spill] sm:$0xff]  ;;  %vm3059_vm3 = vmmov %vm3058_vm0 }
 0x30f   :  { %v392_v36 = vmul.f32 1.442695, %v372_v10  ;;  %vm3060_vm13 = vmmov %vm3058_vm0 }
 0x310   :  { %771 = vadd.xlane.f32.xlu1 %v744_v62  ;;  %765 = vadd.xlane.f32.xlu0 %v741_v29  ;;  %v394_v62 = vmul.f32 1.442695, %v373_v3  ;;  %v3035_v29 = vld [vmem:[#allocation18_spill] sm:$0xff]  ;;  %v3045_v3 = vld [vmem:[#allocation25_spill] sm:$0xff]  ;;  %vm3061_vm2 = vmmov %vm3058_vm0 }
 0x311   :  { %v380_v41 = vsub.f32 %v3035_v29, %v3034_v59  ;;  %v382_v1 = vsub.f32 %v3046_v49, %v3045_v3 }
 0x312   :  { %1757 = vpow2.f32 %v394_v62 }
 0x313   :  { %v408_v38 = vmul.f32 1.442695, %v380_v41  ;;  %1759 = vpow2.f32 %v392_v36  ;;  %v785_v36 = vld [vmem:[#allocation3 + $0x20] sm:$0xff] }
 0x314   :  { %775 = vadd.xlane.f32.xlu1 %v746_v17  ;;  %769 = vadd.xlane.f32.xlu0 %v743_v63  ;;  %v3037_v17 = vld [vmem:[#allocation29_spill] sm:$0xff]  ;;  %v1748_v42 = vpop.eup %1747 }
 0x315   :  { %v381_v63 = vsub.f32 %v3037_v17, %v3036_v46  ;;  %1761 = vpow2.f32 %v408_v38 }
 0x318   :  { %779 = vadd.xlane.f32.xlu1 %v748_v28  ;;  %773 = vadd.xlane.f32.xlu0 %v745_v19  ;;  %v789_v19 = vld [vmem:[#allocation3 + $0x40] sm:$0xff] }
 0x31c   :  { %1009 = vadd.xlane.f32.xlu1 %v990_v54  ;;  %777 = vadd.xlane.f32.xlu0 %v747_v0  ;;  %v3038_v54 = vld [vmem:[#allocation21_spill] sm:$0xff]  ;;  %v3039_v0 = vld [vmem:[#allocation20_spill] sm:$0xff] }
 0x320   :  { %1013 = vadd.xlane.f32.xlu1 %v992_v24  ;;  %1007 = vadd.xlane.f32.xlu0 %v989_v57  ;;  %v375_v24 = vsub.f32 %v3039_v0, %v3038_v54  ;;  %v410_v57 = vmul.f32 1.442695, %v381_v63  ;;  %v412_v0 = vmul.f32 1.442695, %v382_v1 }
 0x322   :  { %1763 = vpow2.f32 %v410_v57 }
 0x324   :  { %1017 = vadd.xlane.f32.xlu1 %v994_v2  ;;  %1011 = vadd.xlane.f32.xlu0 %v991_v60  ;;  %v3040_v2 = vld [vmem:[#allocation23_spill] sm:$0xff]  ;;  %v3041_v60 = vld [vmem:[#allocation22_spill] sm:$0xff] }
 0x328   :  { %1021 = vadd.xlane.f32.xlu1 %v996_v40  ;;  %1015 = vadd.xlane.f32.xlu0 %v993_v16  ;;  %v2738_v13 = vpop.xlane.xlu0 %1057  ;;  %v374_v40 = vsub.f32 %v3041_v60, %v3040_v2  ;;  %v1750_v16 = vpop.eup %1749 }
 0x32a   :  { %v396_v30 = vmul.f32 1.442695, %v374_v40 }
 0x32c   :  { %1025 = vadd.xlane.f32.xlu1 %v998_v52  ;;  %1019 = vadd.xlane.f32.xlu0 %v995_v26  ;;  %v2740_v34 = vpop.xlane.xlu0 %1059  ;;  %v805_v52 = vmul.f32 %v1748_v42, %v789_v19  ;;  %v1752_v26 = vpop.eup %1751  ;;  %v786_v42 = vld [vmem:[#allocation3 + $0x28] sm:$0xff] }
 0x32d   :  { %v1754_v5 = vpop.eup %1753 }
 0x32e   :  { %v1756_v56 = vpop.eup %1755  ;;  %v807_v62 = vmul.f32 %v1754_v5, %v791_v39 }
 0x32f   :  { %v1758_v10 = vpop.eup %1757  ;;  %v808_v29 = vmul.f32 %v1756_v56, %v792_v20 }
 0x330   :  { %1029 = vadd.xlane.f32.xlu1 %v1000_v44  ;;  %1023 = vadd.xlane.f32.xlu0 %v997_v45  ;;  %v2742_v11 = vpop.xlane.xlu0 %1063  ;;  %v783_v45 = vld [vmem:[#allocation3 + $0x10] sm:$0xff]  ;;  %v1760_v41 = vpop.eup %1759  ;;  %v802_v60 = vmul.f32 %v1758_v10, %v786_v42  ;;  %v849_v42 = vld [vmem:[#allocation4 + $0x18] sm:$0xff] }
 0x331   :  { %v799_v47 = vmul.f32 %v1752_v26, %v783_v45  ;;  %v801_v57 = vmul.f32 %v1760_v41, %v785_v36  ;;  %v793_v26 = vld [vmem:[#allocation3 + $0x60] sm:$0xff] }
 0x334   :  { %1033 = vadd.xlane.f32.xlu1 %v1002_v35  ;;  %1027 = vadd.xlane.f32.xlu0 %v999_v51  ;;  %v2746_v32 = vpop.xlane.xlu0 %1067  ;;  %v784_v35 = vld [vmem:[#allocation3 + $0x18] sm:$0xff]  ;;  %v398_v51 = vmul.f32 1.442695, %v375_v24  ;;  %v1762_v24 = vpop.eup %1761 }
 0x335   :  { %v800_v23 = vmul.f32 %v1750_v16, %v784_v35  ;;  %v1764_v40 = vpop.eup %1763 }
 0x336   :  { %1765 = vpow2.f32 %v398_v51 }
 0x337   :  { %1767 = vpow2.f32 %v396_v30 }
 0x338   :  { %1031 = vadd.xlane.f32.xlu0 %v1001_v15  ;;  %v2752_v18 = vpop.xlane.xlu0 %1071  ;;  %1769 = vpow2.f32 %v414_v7  ;;  %v796_v7 = vld [vmem:[#allocation3 + $0x78] sm:$0xff] }
 0x339   :  { %1771 = vpow2.f32 %v412_v0 }
 0x33c   :  { %v2762_v9 = vpop.xlane.xlu0 %1075 }
 0x340   :  { %v2768_v28 = vpop.xlane.xlu0 %1079  ;;  %v1766_v51 = vpop.eup %1765 }
 0x341   :  { %v1768_v61 = vpop.eup %1767 }
 0x342   :  { %v1770_v20 = vpop.eup %1769 }
 0x343   :  { %v812_v10 = vmul.f32 %v1770_v20, %v796_v7  ;;  %v3064_v20 = vld [vmem:[#allocation35_spill] sm:$0xff] }
 0x371   :  { %v718_v44 = vpop.xlane.xlu0 %717 }
 0x372   :  { %v821_v15 = vadd.f32 %v805_v52, %v718_v44  ;;  %v794_v44 = vld [vmem:[#allocation3 + $0x68] sm:$0xff] }
 0x373   :  { %v810_v22 = vmul.f32 %v1764_v40, %v794_v44 }
 0x374   :  { %838 = vst.msk [vmem:[#allocation3 + $0x40] sm:$0xff] %vm3044_vm7, %v821_v15  ;;  %v809_v15 = vmul.f32 %v1762_v24, %v793_v26  ;;  %vm3062_vm7 = vmmov %vm3058_vm0 }
 0x375   :  { %v706_v12 = vpop.xlane.xlu0 %705  ;;  %v708_v48 = vpop.xlane.xlu1 %707 }
 0x376   :  { %v815_v8 = vadd.f32 %v799_v47, %v706_v12  ;;  %v816_v55 = vadd.f32 %v800_v23, %v708_v48  ;;  %v787_v47 = vld [vmem:[#allocation3 + $0x30] sm:$0xff]  ;;  %v788_v23 = vld [vmem:[#allocation3 + $0x38] sm:$0xff] }
 0x377   :  { %v803_v48 = vmul.f32 %v1768_v61, %v787_v47  ;;  %v804_v39 = vmul.f32 %v1766_v51, %v788_v23  ;;  %v850_v61 = vld [vmem:[#allocation4 + $0x20] sm:$0xff] }
 0x378   :  { %832 = vst.msk [vmem:[#allocation3 + $0x10] sm:$0xff] %vm3047_vm15, %v815_v8  ;;  %vm3063_vm15 = vmmov %vm3058_vm0 }
 0x379   :  { %833 = vst.msk [vmem:[#allocation3 + $0x18] sm:$0xff] %vm3048_vm8, %v816_v55  ;;  %v722_v17 = vpop.xlane.xlu0 %721  ;;  %v724_v63 = vpop.xlane.xlu1 %723  ;;  %vm3066_vm8 = vmmov %vm3058_vm0 }
 0x37a   :  { %v823_v19 = vadd.f32 %v807_v62, %v722_v17  ;;  %v824_v38 = vadd.f32 %v808_v29, %v724_v63  ;;  %v1772_v62 = vpop.eup %1771  ;;  %v795_v17 = vld [vmem:[#allocation3 + $0x70] sm:$0xff] }
 0x37c   :  { %840 = vst.msk [vmem:[#allocation3 + $0x50] sm:$0xff] %vm3049_vm5, %v823_v19  ;;  %vm3067_vm5 = vmmov %vm3058_vm0 }
 0x37d   :  { %841 = vst.msk [vmem:[#allocation3 + $0x58] sm:$0xff] %vm3050_vm6, %v824_v38  ;;  %v710_v16 = vpop.xlane.xlu0 %709  ;;  %v712_v52 = vpop.xlane.xlu1 %711  ;;  %v811_v38 = vmul.f32 %v1772_v62, %v795_v17  ;;  %v854_v17 = vld [vmem:[#allocation4 + $0x40] sm:$0xff]  ;;  %vm3068_vm6 = vmmov %vm3058_vm0 }
 0x37e   :  { %v817_v45 = vadd.f32 %v801_v57, %v710_v16  ;;  %v818_v35 = vadd.f32 %v802_v60, %v712_v52  ;;  %v851_v16 = vld [vmem:[#allocation4 + $0x28] sm:$0xff]  ;;  %v848_v52 = vld [vmem:[#allocation4 + $0x10] sm:$0xff] }
 0x380   :  { %834 = vst.msk [vmem:[#allocation3 + $0x20] sm:$0xff] %vm3051_vm10, %v817_v45  ;;  %vm3069_vm10 = vmmov %vm3058_vm0 }
 0x381   :  { %835 = vst.msk [vmem:[#allocation3 + $0x28] sm:$0xff] %vm3052_vm11, %v818_v35  ;;  %v726_v30 = vpop.xlane.xlu0 %725  ;;  %v728_v5 = vpop.xlane.xlu1 %727  ;;  %vm3071_vm11 = vmmov %vm3058_vm0 }
 0x382   :  { %v825_v56 = vadd.f32 %v809_v15, %v726_v30  ;;  %v826_v12 = vadd.f32 %v810_v22, %v728_v5  ;;  %v853_v22 = vld [vmem:[#allocation4 + $0x38] sm:$0xff] }
 0x384   :  { %842 = vst.msk [vmem:[#allocation3 + $0x60] sm:$0xff] %vm3053_vm4, %v825_v56  ;;  %vm3072_vm4 = vmmov %vm3058_vm0 }
 0x385   :  { %843 = vst.msk [vmem:[#allocation3 + $0x68] sm:$0xff] %vm3054_vm9, %v826_v12  ;;  %v714_v8 = vpop.xlane.xlu0 %713  ;;  %v716_v55 = vpop.xlane.xlu1 %715  ;;  %v1102_v12 = vsub.f32 %v2738_v13, %v3022_v4  ;;  %vm3073_vm9 = vmmov %vm3058_vm0 }
 0x386   :  { %v819_v49 = vadd.f32 %v803_v48, %v714_v8  ;;  %v820_v1 = vadd.f32 %v804_v39, %v716_v55  ;;  %v855_v48 = vld [vmem:[#allocation4 + $0x48] sm:$0xff]  ;;  %v852_v39 = vld [vmem:[#allocation4 + $0x30] sm:$0xff]  ;;  %v1101_v8 = vsub.f32 %v3064_v20, %v3024_v33  ;;  %v1106_v33 = vsub.f32 %v2577_v25, %v3038_v54 }
 0x388   :  { %836 = vst.msk [vmem:[#allocation3 + $0x30] sm:$0xff] %vm3055_vm1, %v819_v49  ;;  %v1119_v4 = vmul.f32 1.442695, %v1101_v8  ;;  %vm3074_vm1 = vmmov %vm3058_vm0 }
 0x389   :  { %837 = vst.msk [vmem:[#allocation3 + $0x38] sm:$0xff] %vm3056_vm12, %v820_v1  ;;  %v732_v29 = vpop.xlane.xlu1 %731  ;;  %v1568_v41 = vpop.xlane.xlu0 %1567  ;;  %vm3075_vm12 = vmmov %vm3058_vm0 }
 0x38a   :  { %v828_v63 = vadd.f32 %v812_v10, %v732_v29  ;;  %v1569_v36 = vrot.slane %v1568_v41, 4  ;;  %v3065_v10 = vld [vmem:[#allocation36_spill] sm:$0xff]  ;;  %v1121_v29 = vmul.f32 1.442695, %v1102_v12 }
 0x38b   :  { %v1104_v62 = vsub.f32 %v3065_v10, %v3030_v53  ;;  %v1103_v53 = vsub.f32 %v2740_v34, %v3032_v58  ;;  %v1105_v58 = vsub.f32 %v2742_v11, %v3040_v2  ;;  %v1107_v2 = vsub.f32 %v2746_v32, %v3020_v21 }
 0x38c   :  { %845 = vst.msk [vmem:[#allocation3 + $0x78] sm:$0xff] %vm3057_vm14, %v828_v63  ;;  %v1570_v19 = vadd.f32 %v1569_v36, %v1568_v41  ;;  %v857_v41 = vld [vmem:[#allocation4 + $0x58] sm:$0xff]  ;;  %1773 = vpow2.f32 %v1121_v29  ;;  %vm3076_vm14 = vmmov %vm3058_vm0 }
 0x38d   :  { %v756_v0 = vpop.xlane.xlu1 %755  ;;  %v730_v24 = vpop.xlane.xlu0 %729  ;;  %1775 = vpow2.f32 %v1119_v4  ;;  %v1131_v21 = vmul.f32 1.442695, %v1107_v2 }
 0x38e   :  { %v1571_v57 = vrot.slane %v1570_v19, 2  ;;  %v865_v60 = vadd.f32 %v849_v42, %v756_v0  ;;  %v827_v40 = vadd.f32 %v811_v38, %v730_v24  ;;  %v1125_v38 = vmul.f32 1.442695, %v1104_v62  ;;  %v859_v0 = vld [vmem:[#allocation4 + $0x68] sm:$0xff]  ;;  %v856_v24 = vld [vmem:[#allocation4 + $0x50] sm:$0xff]  ;;  %v1086_v62 = vld [vmem:[#allocation3 + $0x18] sm:$0xff] }
 0x390   :  { %881 = vst.msk [vmem:[#allocation4 + $0x18] sm:$0xff] %vm3058_vm0, %v865_v60  ;;  %v1572_v26 = vadd.f32 %v1571_v57, %v1570_v19  ;;  %1777 = vpow2.f32 %v1125_v38 }
 0x391   :  { %844 = vst.msk [vmem:[#allocation3 + $0x70] sm:$0xff] %vm3059_vm3, %v827_v40  ;;  %v760_v44 = vpop.xlane.xlu1 %759  ;;  %v754_v45 = vpop.xlane.xlu0 %753  ;;  %v1129_v40 = vmul.f32 1.442695, %v1106_v33  ;;  %vm3077_vm3 = vmmov %vm3058_vm0 }
 0x392   :  { %v867_v35 = vadd.f32 %v851_v16, %v760_v44  ;;  %v864_v51 = vadd.f32 %v848_v52, %v754_v45  ;;  %v1573_v15 = vrot.slane %v1572_v26, 1  ;;  %v3070_v16 = vld [vmem:[#allocation26_spill] sm:$0xff]  ;;  %v1123_v44 = vmul.f32 1.442695, %v1103_v53 }
 0x393   :  { %v1108_v54 = vsub.f32 %v2584_v14, %v3070_v16  ;;  %v861_v45 = vld [vmem:[#allocation4 + $0x78] sm:$0xff]  ;;  %1779 = vpow2.f32 %v1129_v40 }
 0x394   :  { %883 = vst.msk [vmem:[#allocation4 + $0x28] sm:$0xff] %vm3060_vm13, %v867_v35  ;;  %v1574_v30 = vadd.f32 %v1573_v15, %v1572_v26  ;;  %v858_v35 = vld [vmem:[#allocation4 + $0x60] sm:$0xff]  ;;  %1781 = vpow2.f32 %v1123_v44  ;;  %vm3078_vm13 = vmmov %vm3058_vm0 }
 0x395   :  { %880 = vst.msk [vmem:[#allocation4 + $0x10] sm:$0xff] %vm3061_vm2, %v864_v51  ;;  %v764_v5 = vpop.xlane.xlu1 %763  ;;  %v758_v47 = vpop.xlane.xlu0 %757  ;;  %v1110_v51 = vsub.f32 %v2590_v43, %v3028_v37  ;;  %v1112_v37 = vsub.f32 %v2598_v27, %v3036_v46  ;;  %vm3079_vm2 = vmmov %vm3058_vm0 }
 0x396   :  { %v869_v23 = vadd.f32 %v853_v22, %v764_v5  ;;  %v866_v56 = vadd.f32 %v850_v61, %v758_v47  ;;  %1689 = vpush %v1574_v30  ;;  %v1133_v61 = vmul.f32 1.442695, %v1108_v54  ;;  %v1127_v47 = vmul.f32 1.442695, %v1105_v58 }
 0x397   :  { %v1137_v12 = vmul.f32 1.442695, %v1110_v51  ;;  %v1198_v29 = vld [vmem:[#allocation4 + $0x18] sm:$0xff]  ;;  %v1141_v4 = vmul.f32 1.442695, %v1112_v37 }
 0x398   :  { %885 = vst.msk [vmem:[#allocation4 + $0x38] sm:$0xff] %vm3062_vm7, %v869_v23  ;;  %v860_v23 = vld [vmem:[#allocation4 + $0x70] sm:$0xff]  ;;  %1783 = vpow2.f32 %v1133_v61  ;;  %vm3080_vm7 = vmmov %vm3058_vm0  ;;  %v1090_v61 = vld [vmem:[#allocation3 + $0x38] sm:$0xff] }
 0x399   :  { %882 = vst.msk [vmem:[#allocation4 + $0x20] sm:$0xff] %vm3063_vm15, %v866_v56  ;;  %v768_v55 = vpop.xlane.xlu1 %767  ;;  %v762_v7 = vpop.xlane.xlu0 %761  ;;  %1785 = vpow2.f32 %v1127_v47  ;;  %vm3081_vm15 = vmmov %vm3058_vm0 }
 0x39a   :  { %v871_v49 = vadd.f32 %v855_v48, %v768_v55  ;;  %v868_v1 = vadd.f32 %v852_v39, %v762_v7  ;;  %v1774_v56 = vpop.eup %1773  ;;  %1787 = vpow2.f32 %v1137_v12 }
 0x39b   :  { %1789 = vpow2.f32 %v1131_v21 }
 0x39c   :  { %887 = vst.msk [vmem:[#allocation4 + $0x48] sm:$0xff] %vm3066_vm8, %v871_v49  ;;  %v1776_v49 = vpop.eup %1775  ;;  %1791 = vpow2.f32 %v1141_v4  ;;  %vm3082_vm8 = vmmov %vm3058_vm0 }
 0x39d   :  { %884 = vst.msk [vmem:[#allocation4 + $0x30] sm:$0xff] %vm3067_vm5, %v868_v1  ;;  %v772_v63 = vpop.xlane.xlu1 %771  ;;  %v766_v36 = vpop.xlane.xlu0 %765  ;;  %v1109_v1 = vsub.f32 %v2752_v18, %v3026_v6  ;;  %vm3083_vm5 = vmmov %vm3058_vm0 }
 0x39e   :  { %v873_v42 = vadd.f32 %v857_v41, %v772_v63  ;;  %v870_v19 = vadd.f32 %v854_v17, %v766_v36  ;;  %v1778_v46 = vpop.eup %1777  ;;  %v1114_v63 = vsub.f32 %v2611_v50, %v3042_v31  ;;  %v1200_v31 = vld [vmem:[#allocation4 + $0x28] sm:$0xff] }
 0x39f   :  { %v1135_v53 = vmul.f32 1.442695, %v1109_v1  ;;  %v1089_v1 = vld [vmem:[#allocation3 + $0x30] sm:$0xff] }
 0x3a0   :  { %889 = vst.msk [vmem:[#allocation4 + $0x58] sm:$0xff] %vm3068_vm6, %v873_v42  ;;  %v1085_v42 = vld [vmem:[#allocation3 + $0x10] sm:$0xff]  ;;  %vm3084_vm6 = vmmov %vm3058_vm0 }
 0x3a1   :  { %886 = vst.msk [vmem:[#allocation4 + $0x40] sm:$0xff] %vm3069_vm10, %v870_v19  ;;  %v776_v57 = vpop.xlane.xlu1 %775  ;;  %v770_v60 = vpop.xlane.xlu0 %769  ;;  %1793 = vpow2.f32 %v1135_v53  ;;  %vm3085_vm10 = vmmov %vm3058_vm0 }
 0x3a2   :  { %v875_v52 = vadd.f32 %v859_v0, %v776_v57  ;;  %v872_v26 = vadd.f32 %v856_v24, %v770_v60  ;;  %v1111_v0 = vsub.f32 %v2762_v9, %v3034_v59  ;;  %v1088_v24 = vld [vmem:[#allocation3 + $0x28] sm:$0xff]  ;;  %v1197_v57 = vld [vmem:[#allocation4 + $0x10] sm:$0xff]  ;;  %v1780_v60 = vpop.eup %1779 }
 0x3a3   :  { %v1204_v21 = vld [vmem:[#allocation4 + $0x48] sm:$0xff] }
 0x3a4   :  { %891 = vst.msk [vmem:[#allocation4 + $0x68] sm:$0xff] %vm3071_vm11, %v875_v52  ;;  %vm3086_vm11 = vmmov %vm3058_vm0 }
 0x3a5   :  { %888 = vst.msk [vmem:[#allocation4 + $0x50] sm:$0xff] %vm3072_vm4, %v872_v26  ;;  %v780_v15 = vpop.xlane.xlu1 %779  ;;  %v774_v22 = vpop.xlane.xlu0 %773  ;;  %vm3087_vm4 = vmmov %vm3058_vm0 }
 0x3a6   :  { %v877_v30 = vadd.f32 %v861_v45, %v780_v15  ;;  %v874_v5 = vadd.f32 %v858_v35, %v774_v22  ;;  %v1782_v26 = vpop.eup %1781  ;;  %v1087_v45 = vld [vmem:[#allocation3 + $0x20] sm:$0xff]  ;;  %v1139_v15 = vmul.f32 1.442695, %v1111_v0  ;;  %v1113_v22 = vsub.f32 %v2768_v28, %v3045_v3 }
 0x3a7   :  { %v1784_v47 = vpop.eup %1783 }
 0x3a8   :  { %893 = vst.msk [vmem:[#allocation4 + $0x78] sm:$0xff] %vm3073_vm9, %v877_v30  ;;  %v1202_v30 = vld [vmem:[#allocation4 + $0x38] sm:$0xff]  ;;  %v1786_v37 = vpop.eup %1785  ;;  %vm3088_vm9 = vmmov %vm3058_vm0  ;;  %v1203_v53 = vld [vmem:[#allocation4 + $0x40] sm:$0xff] }
 0x3a9   :  { %890 = vst.msk [vmem:[#allocation4 + $0x60] sm:$0xff] %vm3074_vm1, %v874_v5  ;;  %v1010_v48 = vpop.xlane.xlu1 %1009  ;;  %v778_v39 = vpop.xlane.xlu0 %777  ;;  %v1199_v5 = vld [vmem:[#allocation4 + $0x20] sm:$0xff]  ;;  %vm3089_vm1 = vmmov %vm3058_vm0 }
 0x3aa   :  { %v1150_v8 = vmul.f32 %v1774_v56, %v1010_v48  ;;  %v1214_v55 = vmul.f32 %v2738_v13, %v1010_v48  ;;  %v876_v7 = vadd.f32 %v860_v23, %v778_v39 }
 0x3ac   :  { %v1166_v41 = vsub.f32 %v1086_v62, %v1150_v8  ;;  %v1230_v17 = vsub.f32 %v1198_v29, %v1214_v55  ;;  %892 = vst.msk [vmem:[#allocation4 + $0x70] sm:$0xff] %vm3075_vm12, %v876_v7  ;;  %v1788_v7 = vpop.eup %1787  ;;  %v1201_v62 = vld [vmem:[#allocation4 + $0x30] sm:$0xff]  ;;  %vm3090_vm12 = vmmov %vm3058_vm0 }
 0x3ad   :  { %v1014_v13 = vpop.xlane.xlu1 %1013  ;;  %v1008_v36 = vpop.xlane.xlu0 %1007 }
 0x3ae   :  { %1182 = vst.msk [vmem:[#allocation3 + $0x18] sm:$0xff] %vm3076_vm14, %v1166_v41  ;;  %v1152_v33 = vmul.f32 %v1778_v46, %v1014_v13  ;;  %v1216_v6 = vmul.f32 %v3065_v10, %v1014_v13  ;;  %v1149_v19 = vmul.f32 %v1776_v49, %v1008_v36  ;;  %v1213_v38 = vmul.f32 %v3064_v20, %v1008_v36  ;;  %v1790_v4 = vpop.eup %1789  ;;  %v1091_v36 = vld [vmem:[#allocation3 + $0x40] sm:$0xff]  ;;  %vm3091_vm14 = vmmov %vm3058_vm0 }
 0x3af   :  { %1246 = vst.msk [vmem:[#allocation4 + $0x18] sm:$0xff] %vm3058_vm0, %v1230_v17  ;;  %v1145_v10 = vmul.f32 1.442695, %v1114_v63  ;;  %v1143_v49 = vmul.f32 1.442695, %v1113_v22 }
 0x3b0   :  { %v1168_v40 = vsub.f32 %v1088_v24, %v1152_v33  ;;  %v1232_v16 = vsub.f32 %v1200_v31, %v1216_v6  ;;  %v1165_v54 = vsub.f32 %v1085_v42, %v1149_v19  ;;  %v1229_v52 = vsub.f32 %v1197_v57, %v1213_v38  ;;  %v1792_v42 = vpop.eup %1791  ;;  %v1094_v19 = vld [vmem:[#allocation3 + $0x58] sm:$0xff] }
 0x3b1   :  { %v1018_v44 = vpop.xlane.xlu1 %1017  ;;  %v1012_v58 = vpop.xlane.xlu0 %1011  ;;  %1795 = vpow2.f32 %v1145_v10  ;;  %v1206_v38 = vld [vmem:[#allocation4 + $0x58] sm:$0xff] }
 0x3b2   :  { %1184 = vst.msk [vmem:[#allocation3 + $0x28] sm:$0xff] %vm3077_vm3, %v1168_v40  ;;  %v1154_v59 = vmul.f32 %v1780_v60, %v1018_v44  ;;  %v1218_v20 = vmul.f32 %v2577_v25, %v1018_v44  ;;  %v1151_v35 = vmul.f32 %v1782_v26, %v1012_v58  ;;  %v1215_v51 = vmul.f32 %v2740_v34, %v1012_v58  ;;  %v1092_v34 = vld [vmem:[#allocation3 + $0x48] sm:$0xff]  ;;  %v1794_v60 = vpop.eup %1793  ;;  %vm3092_vm3 = vmmov %vm3058_vm0 }
 0x3b3   :  { %1248 = vst.msk [vmem:[#allocation4 + $0x28] sm:$0xff] %vm3078_vm13, %v1232_v16  ;;  %1797 = vpow2.f32 %v1139_v15  ;;  %v1096_v44 = vld [vmem:[#allocation3 + $0x68] sm:$0xff]  ;;  %vm3093_vm13 = vmmov %vm3058_vm0 }
 0x3b4   :  { %1181 = vst.msk [vmem:[#allocation3 + $0x10] sm:$0xff] %vm3079_vm2, %v1165_v54  ;;  %v1170_v2 = vsub.f32 %v1090_v61, %v1154_v59  ;;  %v1234_v23 = vsub.f32 %v1202_v30, %v1218_v20  ;;  %v1167_v56 = vsub.f32 %v1087_v45, %v1151_v35  ;;  %v1231_v12 = vsub.f32 %v1199_v5, %v1215_v51  ;;  %v1093_v54 = vld [vmem:[#allocation3 + $0x50] sm:$0xff]  ;;  %v1208_v58 = vld [vmem:[#allocation4 + $0x68] sm:$0xff]  ;;  %vm3094_vm2 = vmmov %vm3058_vm0 }
 0x3b5   :  { %1245 = vst.msk [vmem:[#allocation4 + $0x10] sm:$0xff] %vm3080_vm7, %v1229_v52  ;;  %v1022_v25 = vpop.xlane.xlu1 %1021  ;;  %v1016_v48 = vpop.xlane.xlu0 %1015  ;;  %1799 = vpow2.f32 %v1143_v49  ;;  %v1205_v59 = vld [vmem:[#allocation4 + $0x50] sm:$0xff]  ;;  %vm3095_vm7 = vmmov %vm3058_vm0  ;;  %v1095_v30 = vld [vmem:[#allocation3 + $0x60] sm:$0xff] }
 0x3b6   :  { %1186 = vst.msk [vmem:[#allocation3 + $0x38] sm:$0xff] %vm3081_vm15, %v1170_v2  ;;  %v1156_v3 = vmul.f32 %v1784_v47, %v1022_v25  ;;  %v1220_v39 = vmul.f32 %v2584_v14, %v1022_v25  ;;  %v1153_v8 = vmul.f32 %v1786_v37, %v1016_v48  ;;  %v1217_v55 = vmul.f32 %v2742_v11, %v1016_v48  ;;  %v1098_v2 = vld [vmem:[#allocation3 + $0x78] sm:$0xff]  ;;  %vm3096_vm15 = vmmov %vm3058_vm0 }
 0x3b7   :  { %1250 = vst.msk [vmem:[#allocation4 + $0x38] sm:$0xff] %vm3082_vm8, %v1234_v23  ;;  %v1210_v23 = vld [vmem:[#allocation4 + $0x78] sm:$0xff]  ;;  %vm3097_vm8 = vmmov %vm3058_vm0 }
 0x3b8   :  { %1183 = vst.msk [vmem:[#allocation3 + $0x20] sm:$0xff] %vm3083_vm5, %v1167_v56  ;;  %v1172_v29 = vsub.f32 %v1092_v34, %v1156_v3  ;;  %v1236_v41 = vsub.f32 %v1204_v21, %v1220_v39  ;;  %v1169_v17 = vsub.f32 %v1089_v1, %v1153_v8  ;;  %v1233_v46 = vsub.f32 %v1201_v62, %v1217_v55  ;;  %v1207_v56 = vld [vmem:[#allocation4 + $0x60] sm:$0xff]  ;;  %vm3098_vm5 = vmmov %vm3058_vm0  ;;  %v1097_v39 = vld [vmem:[#allocation3 + $0x70] sm:$0xff] }
 0x3b9   :  { %1247 = vst.msk [vmem:[#allocation4 + $0x20] sm:$0xff] %vm3084_vm6, %v1231_v12  ;;  %v1026_v63 = vpop.xlane.xlu1 %1025  ;;  %v1020_v13 = vpop.xlane.xlu0 %1019  ;;  %vm3099_vm6 = vmmov %vm3058_vm0  ;;  %v1209_v8 = vld [vmem:[#allocation4 + $0x70] sm:$0xff] }
 0x3ba   :  { %1188 = vst.msk [vmem:[#allocation3 + $0x48] sm:$0xff] %vm3085_vm10, %v1172_v29  ;;  %v1158_v14 = vmul.f32 %v1788_v7, %v1026_v63  ;;  %v1222_v11 = vmul.f32 %v2590_v43, %v1026_v63  ;;  %v1155_v33 = vmul.f32 %v1790_v4, %v1020_v13  ;;  %v1219_v6 = vmul.f32 %v2746_v32, %v1020_v13  ;;  %vm3100_vm10 = vmmov %vm3058_vm0 }
 0x3bb   :  { %1252 = vst.msk [vmem:[#allocation4 + $0x48] sm:$0xff] %vm3086_vm11, %v1236_v41  ;;  %v1796_v10 = vpop.eup %1795  ;;  %vm3101_vm11 = vmmov %vm3058_vm0 }
 0x3bc   :  { %1185 = vst.msk [vmem:[#allocation3 + $0x30] sm:$0xff] %vm3087_vm4, %v1169_v17  ;;  %v1174_v0 = vsub.f32 %v1094_v19, %v1158_v14  ;;  %v1238_v24 = vsub.f32 %v1206_v38, %v1222_v11  ;;  %v1171_v31 = vsub.f32 %v1091_v36, %v1155_v33  ;;  %v1235_v57 = vsub.f32 %v1203_v53, %v1219_v6 }
 0x3bd   :  { %1249 = vst.msk [vmem:[#allocation4 + $0x30] sm:$0xff] %vm3088_vm9, %v1233_v46  ;;  %v1030_v40 = vpop.xlane.xlu1 %1029  ;;  %v1024_v16 = vpop.xlane.xlu0 %1023 }
 0x3be   :  { %1190 = vst.msk [vmem:[#allocation3 + $0x58] sm:$0xff] %vm3089_vm1, %v1174_v0  ;;  %v1160_v43 = vmul.f32 %v1792_v42, %v1030_v40  ;;  %v1224_v32 = vmul.f32 %v2598_v27, %v1030_v40  ;;  %v1157_v52 = vmul.f32 %v1794_v60, %v1024_v16  ;;  %v1221_v26 = vmul.f32 %v2752_v18, %v1024_v16  ;;  %v1798_v15 = vpop.eup %1797 }
 0x3bf   :  { %1254 = vst.msk [vmem:[#allocation4 + $0x58] sm:$0xff] %vm3090_vm12, %v1238_v24  ;;  %v1800_v34 = vpop.eup %1799 }
 0x3c0   :  { %1187 = vst.msk [vmem:[#allocation3 + $0x40] sm:$0xff] %vm3091_vm14, %v1171_v31  ;;  %v1176_v20 = vsub.f32 %v1096_v44, %v1160_v43  ;;  %v1240_v45 = vsub.f32 %v1208_v58, %v1224_v32  ;;  %v1173_v35 = vsub.f32 %v1093_v54, %v1157_v52  ;;  %v1237_v51 = vsub.f32 %v1205_v59, %v1221_v26 }
 0x3c1   :  { %1251 = vst.msk [vmem:[#allocation4 + $0x40] sm:$0xff] %vm3058_vm0, %v1235_v57  ;;  %v1034_v22 = vpop.xlane.xlu1 %1033  ;;  %v1028_v61 = vpop.xlane.xlu0 %1027 }
 0x3c2   :  { %1192 = vst.msk [vmem:[#allocation3 + $0x68] sm:$0xff] %vm3092_vm3, %v1176_v20  ;;  %v1162_v27 = vmul.f32 %v1796_v10, %v1034_v22  ;;  %v1226_v18 = vmul.f32 %v2611_v50, %v1034_v22  ;;  %v1159_v5 = vmul.f32 %v1798_v15, %v1028_v61  ;;  %v1223_v47 = vmul.f32 %v2762_v9, %v1028_v61 }
 0x3c3   :  { %1256 = vst.msk [vmem:[#allocation4 + $0x68] sm:$0xff] %vm3093_vm13, %v1240_v45 }
 0x3c4   :  { %1189 = vst.msk [vmem:[#allocation3 + $0x50] sm:$0xff] %vm3094_vm2, %v1173_v35  ;;  %v1178_v12 = vsub.f32 %v1098_v2, %v1162_v27  ;;  %v1242_v37 = vsub.f32 %v1210_v23, %v1226_v18  ;;  %v1175_v25 = vsub.f32 %v1095_v30, %v1159_v5  ;;  %v1239_v48 = vsub.f32 %v1207_v56, %v1223_v47 }
 0x3c5   :  { %1253 = vst.msk [vmem:[#allocation4 + $0x50] sm:$0xff] %vm3095_vm7, %v1237_v51  ;;  %v1032_v3 = vpop.xlane.xlu0 %1031 }
 0x3c6   :  { %1194 = vst.msk [vmem:[#allocation3 + $0x78] sm:$0xff] %vm3096_vm15, %v1178_v12  ;;  %v1161_v50 = vmul.f32 %v1800_v34, %v1032_v3  ;;  %v1225_v9 = vmul.f32 %v2768_v28, %v1032_v3 }
 0x3c7   :  { %1258 = vst.msk [vmem:[#allocation4 + $0x78] sm:$0xff] %vm3097_vm8, %v1242_v37  ;;  %s1690_s14 = spop %1689 }
 0x3c8   :  { %1191 = vst.msk [vmem:[#allocation3 + $0x60] sm:$0xff] %vm3098_vm5, %v1175_v25  ;;  %v1177_v55 = vsub.f32 %v1097_v39, %v1161_v50  ;;  %v1241_v7 = vsub.f32 %v1209_v8, %v1225_v9  ;;  %v1576_v49 = vstv %s1690_s14 }
 0x3c9   :  { %1255 = vst.msk [vmem:[#allocation4 + $0x60] sm:$0xff] %vm3099_vm6, %v1239_v48  ;;  %1577 = vst [vmem:[#allocation5] sm:$0xff] %v1576_v49 }
 0x3ca   :  { %1193 = vst.msk [vmem:[#allocation3 + $0x70] sm:$0xff] %vm3100_vm10, %v1177_v55 }
 0x3cb   :  { %1257 = vst.msk [vmem:[#allocation4 + $0x70] sm:$0xff] %vm3101_vm11, %v1241_v7 }
 0x3cc   :  { %1812 = shalt.err (!%p1809_p4)
}
 0x3cd   :  { %s1813_s18 = scalar_lea.hbm %s2892_s5, 128 }
 0x3ce   :  { %p1814_p5 = scmp.ne.s32.totalorder %s2892_s5, %s1813_s18  ;;  %p1817_p6 = scmp.lt.u32.totalorder %s1813_s18, %s2892_s5 }
 0x3d0   :  { %p1819_p7 = pnand %p1817_p6, %p1814_p5 }
 0x3d2   :  { %1822 = shalt.err (!%p1819_p7)
}
 0x3d3   :  { %1587 = dma.vmem_to_hbm [thread:$0]  %s1585_s13, 128, %s2892_s5, [#allocation6]  }
 0x3d4   :  { %1823 = dma.done.wait [#allocation6], 128  }
 0x3d5   :  { %1824 = vsyncadd [#allocation6], 4294967168 }
 0x3d6   :  { %1591 = vsyncpa [#allocation6], 1 }

</bundles_post_ra>
